<compile_context>
chip_gen: v7x
topology: tpu7x:2x2x1
jax: 0.10.0
libtpu: 0.0.40
codegen_flags: <defaults>
</compile_context>

<pallas_src>
import jax
import jax.numpy as jnp
import numpy as np
from jax.experimental import pallas as pl
from jax.experimental.pallas import tpu as pltpu

KW_LIST = tuple(range(2, 14))          # kernel widths 2..13 (12 convs)
NUM_CONV = len(KW_LIST)
MAX_KW = max(KW_LIST)                  # 13
PAD_W_LEFT = (MAX_KW - 1) // 2         # 6  (global width padding)
PAD_W_RIGHT = MAX_KW - 1 - PAD_W_LEFT  # 6
LANE = 128


def pack_params(weights, biases, in_ch, out_ch, in_dim):
    """One-time host-side packing of all 12 convs into a single matmul weight.

    Row layout matches the im2col feature order kwi*K + kh*in_ch + ic, with each
    conv's 'same'-padding tap shift baked in (zero rows elsewhere).  Channel
    columns are padded up to a multiple of 128 with zeros for lane-dense stores.
    """
    H = in_dim
    K = H * in_ch
    D = MAX_KW * K
    C_total = NUM_CONV * out_ch
    C_pad = ((C_total + LANE - 1) // LANE) * LANE
    wpack = np.zeros((D, C_pad), np.float32)
    bpack = np.zeros((1, C_pad), np.float32)
    for c, (w, kw) in enumerate(zip(weights, KW_LIST)):
        shift = PAD_W_LEFT - (kw - 1) // 2
        # (out_ch, in_ch, H, kw) -> (kw, H, in_ch, out_ch) -> (kw*K, out_ch)
        wt = np.transpose(np.asarray(w), (3, 2, 1, 0)).reshape(kw * K, out_ch)
        wpack[shift * K:(shift + kw) * K, c * out_ch:(c + 1) * out_ch] = wt
        bpack[0, c * out_ch:(c + 1) * out_ch] = np.asarray(biases[c])
    return jnp.asarray(wpack), jnp.asarray(bpack)


def make_forward(in_ch, out_ch, in_dim, out_max, tile_rows=64):
    """Returns forward(x_nchw, wpack, bpack) -> (N, 12*out_ch, H, W-out_max+1)."""
    H = in_dim                          # conv kernel height == input height
    K = H * in_ch                       # im2col depth per width tap
    D = MAX_KW * K                      # fused im2col depth (13 * H * in_ch)
    C_total = NUM_CONV * out_ch
    C_pad = ((C_total + LANE - 1) // LANE) * LANE
    top = (H - 1) // 2                  # PyTorch 'same': smaller pad first
    bottom = (H - 1) - top

    def forward(x_nchw, wpack, bpack):
        N = x_nchw.shape[0]
        W = x_nchw.shape[3]
        W_out = W - out_max + 1
        R = N * H                       # output rows (one per (n, h))
        TR = min(tile_rows, R)          # rows per grid block (TR*W M-rows / block)
        n_blk = -(-R // TR)
        R_pad = n_blk * TR

        # ---------------- layout glue (plain JAX, no FLOPs) ----------------
        x_nhwc = jnp.transpose(x_nchw, (0, 2, 3, 1))            # (N, H, W, Cin)
        x_hp = jnp.pad(x_nhwc, ((0, 0), (top, bottom), (0, 0), (0, 0)))
        # height im2col (H slices): q[n,h,w, kh*in_ch+ic] = x_hp[n, h+kh, w, ic]
        q = jnp.concatenate([x_hp[:, kh:kh + H, :, :] for kh in range(H)],
                            axis=-1)                             # (N, H, W, K)
        q = jnp.pad(q, ((0, 0), (0, 0), (PAD_W_LEFT, PAD_W_RIGHT), (0, 0)))
        # width im2col (13 slices): p2[..., kwi*K+f] = q[n, h, w+kwi, f]
        p2 = jnp.concatenate([q[:, :, kwi:kwi + W, :] for kwi in range(MAX_KW)],
                             axis=-1)                            # (N, H, W, D)
        p2 = p2.reshape(R * W, D)
        if R_pad != R:
            p2 = jnp.pad(p2, ((0, (R_pad - R) * W), (0, 0)))

        # ----------------------------- kernel ------------------------------
        def kernel(p_ref, w_ref, b_ref, o_ref):
            # p_ref: (TR*W, D)   w_ref: (D, C_pad)   b_ref: (1, C_pad)
            # o_ref: (TR, W_out, C_pad)
            acc = jnp.dot(p_ref[...], w_ref[...],
                          preferred_element_type=jnp.float32)    # one MXU matmul
            r = jnp.maximum(acc + b_ref[...], 0.0)               # bias + ReLU
            r = r.reshape(TR, W, C_pad)
            # MaxPool2d((1, out_max), stride (1, 1)) along W
            pooled = r[:, 0:W_out, :]
            for j in range(1, out_max):
                pooled = jnp.maximum(pooled, r[:, j:j + W_out, :])
            # F.normalize(p=2, dim=channel, eps=1e-12): one reciprocal per pixel
            ssq = jnp.sum(pooled * pooled, axis=-1, keepdims=True)
            inv = 1.0 / jnp.maximum(jnp.sqrt(ssq), 1e-12)
            o_ref[...] = pooled * inv                             # lane-dense store

        out = pl.pallas_call(
            kernel,
            out_shape=jax.ShapeDtypeStruct((R_pad, W_out, C_pad), jnp.float32),
            grid=(n_blk,),
            in_specs=[
                pl.BlockSpec((TR * W, D), lambda i: (i, 0)),
                pl.BlockSpec((D, C_pad), lambda i: (0, 0)),       # resident
                pl.BlockSpec((1, C_pad), lambda i: (0, 0)),       # resident
            ],
            out_specs=pl.BlockSpec((TR, W_out, C_pad), lambda i: (i, 0, 0)),
            compiler_params=pltpu.CompilerParams(
                dimension_semantics=("parallel",),
                vmem_limit_bytes=32 * 1024 * 1024),
        )(p2, wpack, bpack)

        out = out[:R, :, :C_total].reshape(N, H, W_out, C_total)
        return jnp.transpose(out, (0, 3, 1, 2))                   # back to NCHW

    return forward


def reference(x, weights, biases, in_dim, out_max):
    """Pure-JAX reference matching PyTorch semantics (for verification)."""
    H = in_dim
    top = (H - 1) // 2
    bottom = (H - 1) - top
    outs = []
    for w, b, kw in zip(weights, biases, KW_LIST):
        left = (kw - 1) // 2
        right = (kw - 1) - left
        y = jax.lax.conv_general_dilated(
            x, w, window_strides=(1, 1),
            padding=((top, bottom), (left, right)),
            dimension_numbers=('NCHW', 'OIHW', 'NCHW'))
        y = jnp.maximum(y + b[None, :, None, None], 0.0)
        y = jax.lax.reduce_window(y, -jnp.inf, jax.lax.max,
                                  (1, 1, 1, out_max), (1, 1, 1, 1), 'VALID')
        outs.append(y)
    cat = jnp.concatenate(outs, axis=1)
    denom = jnp.maximum(jnp.sqrt(jnp.sum(cat * cat, axis=1, keepdims=True)),
                        1e-12)
    return cat / denom


if __name__ == "__main__":
    # Small shapes consistent with the module: x is (N, in_ch, in_dim, W).
    N, in_ch, out_ch = 2, 4, 8
    in_dim, W, out_max = 8, 16, 4

    key = jax.random.PRNGKey(0)
    keys = jax.random.split(key, 1 + 2 * NUM_CONV)
    x = jax.random.normal(keys[0], (N, in_ch, in_dim, W), jnp.float32)

    # Deterministic parameter init (PyTorch-default-style uniform bounds).
    weights, biases = [], []
    for c, kw in enumerate(KW_LIST):
        fan_in = in_ch * in_dim * kw
        bound = 1.0 / float(fan_in) ** 0.5
        wk = jax.random.uniform(keys[1 + 2 * c], (out_ch, in_ch, in_dim, kw),
                                jnp.float32, -bound, bound)
        bk = jax.random.uniform(keys[2 + 2 * c], (out_ch,),
                                jnp.float32, -bound, bound)
        weights.append(wk)
        biases.append(bk)

    # One-time (outside jit) weight/bias packing.
    wpack, bpack = pack_params(weights, biases, in_ch, out_ch, in_dim)

    fwd = jax.jit(make_forward(in_ch, out_ch, in_dim, out_max))
    out = jax.block_until_ready(fwd(x, wpack, bpack))
    ref = jax.block_until_ready(reference(x, weights, biases, in_dim, out_max))

    assert out.shape == (N, NUM_CONV * out_ch, in_dim, W - out_max + 1), out.shape
    if not np.allclose(np.asarray(out), np.asarray(ref), atol=1e-4, rtol=1e-4):
        raise AssertionError("Pallas kernel does not match reference")
    print("KERNEL_OK")
</pallas_src>

<mosaic_0001>
module attributes {stable_mosaic.version = 11 : i64} {
  func.func @kernel(%arg0: i32, %arg1: memref<256x416xf32, #tpu.memory_space<vmem>>, %arg2: memref<416x128xf32, #tpu.memory_space<vmem>>, %arg3: memref<1x128xf32, #tpu.memory_space<vmem>>, %arg4: memref<16x13x128xf32, #tpu.memory_space<vmem>>) attributes {dimension_semantics = [#tpu.dimension_semantics<parallel>], iteration_bounds = array<i64: 1>, scalar_prefetch = 0 : i64, scratch_operands = 0 : i64, tpu.core_type = #tpu.core_type<tc>, window_params = [{transform_indices = @transform_0, window_bounds = array<i64: 256, 416>}, {pipeline_mode = #tpu.pipeline_mode<synchronous>, transform_indices = @transform_1, window_bounds = array<i64: 416, 128>}, {pipeline_mode = #tpu.pipeline_mode<synchronous>, transform_indices = @transform_2, window_bounds = array<i64: 1, 128>}, {transform_indices = @transform_3, window_bounds = array<i64: 16, 13, 128>}]} {
    %c0 = arith.constant 0 : index
    %c0_0 = arith.constant 0 : index
    %0 = vector.load %arg1[%c0, %c0_0] : memref<256x416xf32, #tpu.memory_space<vmem>>, vector<256x416xf32>
    %c0_1 = arith.constant 0 : index
    %c0_2 = arith.constant 0 : index
    %1 = vector.load %arg2[%c0_1, %c0_2] : memref<416x128xf32, #tpu.memory_space<vmem>>, vector<416x128xf32>
    %cst = arith.constant dense<0.000000e+00> : vector<256x128xf32>
    %2 = tpu.matmul %0, %1, %cst {dimension_numbers = #tpu.dot_dimension_numbers<[1], [0], [0], [1], [0, 0, 1, 1], [], []>} : vector<256x416xf32>, vector<416x128xf32>, vector<256x128xf32> -> vector<256x128xf32>
    %c0_3 = arith.constant 0 : index
    %c0_4 = arith.constant 0 : index
    %3 = vector.load %arg3[%c0_3, %c0_4] : memref<1x128xf32, #tpu.memory_space<vmem>>, vector<1x128xf32>
    %4 = vector.broadcast %3 : vector<1x128xf32> to vector<256x128xf32>
    %5 = arith.addf %2, %4 : vector<256x128xf32>
    %cst_5 = arith.constant 0.000000e+00 : f32
    %6 = vector.broadcast %cst_5 : f32 to vector<256x128xf32>
    %7 = arith.maximumf %5, %6 : vector<256x128xf32>
    %8 = vector.shape_cast %7 : vector<256x128xf32> to vector<16x16x128xf32>
    %9 = vector.extract_strided_slice %8 {offsets = [0, 0, 0], sizes = [16, 13, 128], strides = [1, 1, 1]} : vector<16x16x128xf32> to vector<16x13x128xf32>
    %10 = vector.extract_strided_slice %8 {offsets = [0, 1, 0], sizes = [16, 13, 128], strides = [1, 1, 1]} : vector<16x16x128xf32> to vector<16x13x128xf32>
    %11 = arith.maximumf %9, %10 : vector<16x13x128xf32>
    %12 = vector.extract_strided_slice %8 {offsets = [0, 2, 0], sizes = [16, 13, 128], strides = [1, 1, 1]} : vector<16x16x128xf32> to vector<16x13x128xf32>
    %13 = arith.maximumf %11, %12 : vector<16x13x128xf32>
    %14 = vector.extract_strided_slice %8 {offsets = [0, 3, 0], sizes = [16, 13, 128], strides = [1, 1, 1]} : vector<16x16x128xf32> to vector<16x13x128xf32>
    %15 = arith.maximumf %13, %14 : vector<16x13x128xf32>
    %16 = arith.mulf %15, %15 : vector<16x13x128xf32>
    %cst_6 = arith.constant dense<0.000000e+00> : vector<16x13xf32>
    %17 = vector.multi_reduction <add>, %16, %cst_6 [2] : vector<16x13x128xf32> to vector<16x13xf32>
    %18 = vector.shape_cast %17 : vector<16x13xf32> to vector<16x13x1xf32>
    %19 = math.sqrt %18 : vector<16x13x1xf32>
    %cst_7 = arith.constant 9.99999996E-13 : f32
    %20 = vector.broadcast %cst_7 : f32 to vector<16x13x1xf32>
    %21 = arith.maximumf %19, %20 : vector<16x13x1xf32>
    %cst_8 = arith.constant 1.000000e+00 : f32
    %22 = vector.broadcast %cst_8 : f32 to vector<16x13x1xf32>
    %23 = arith.divf %22, %21 : vector<16x13x1xf32>
    %24 = vector.broadcast %23 : vector<16x13x1xf32> to vector<16x13x128xf32>
    %25 = arith.mulf %15, %24 : vector<16x13x128xf32>
    %c0_9 = arith.constant 0 : index
    %c0_10 = arith.constant 0 : index
    %c0_11 = arith.constant 0 : index
    %26 = vector.load %arg4[%c0_9, %c0_10, %c0_11] : memref<16x13x128xf32, #tpu.memory_space<vmem>>, vector<16x13x128xf32>
    tpu.vector_store %arg4[%c0_9, %c0_10, %c0_11], %25 {strides = array<i32>} : memref<16x13x128xf32, #tpu.memory_space<vmem>>, vector<16x13x128xf32>,
    return
  }
  func.func @transform_0(%arg0: i32) -> (i32, i32) {
    %c0_i32 = arith.constant 0 : i32
    %c0_i32_0 = arith.constant 0 : i32
    return %arg0, %c0_i32 : i32, i32
  }
  func.func @transform_1(%arg0: i32) -> (i32, i32) {
    %c0_i32 = arith.constant 0 : i32
    %c0_i32_0 = arith.constant 0 : i32
    %c0_i32_1 = arith.constant 0 : i32
    return %c0_i32, %c0_i32_0 : i32, i32
  }
  func.func @transform_2(%arg0: i32) -> (i32, i32) {
    %c0_i32 = arith.constant 0 : i32
    %c0_i32_0 = arith.constant 0 : i32
    %c0_i32_1 = arith.constant 0 : i32
    return %c0_i32, %c0_i32_0 : i32, i32
  }
  func.func @transform_3(%arg0: i32) -> (i32, i32, i32) {
    %c0_i32 = arith.constant 0 : i32
    %c0_i32_0 = arith.constant 0 : i32
    %c0_i32_1 = arith.constant 0 : i32
    return %arg0, %c0_i32, %c0_i32_0 : i32, i32, i32
  }
}

</mosaic_0001>

<bundles_post_ra>
// kernel: forward.1
= control target key start
LH: loop header
LB: loop body
LE: loop exit
PB: predicated region body
PF: predicated region fallthrough
CT: control target
= control target key end

     0   :  { %v1955_v0 = vmov 0.0|0.0   ;;  %vm201_vm0 = vcmask 261120   ;;  %vm812_vm1 = vcmask 1046528   ;;  %vm925_vm2 = vcmask 1045504   ;;  %s3012_s1 = inlined_call_operand.vmem [shape: f32[416,128], index: 1, kind: input, shape index: {}]   ;;  %s3013_s0 = inlined_call_operand.vmem [shape: f32[256,416], index: 0, kind: input, shape index: {}]   ;;  %s3014_s2 = inlined_call_operand.vmem [shape: f32[1,128], index: 2, kind: input, shape index: {}]   ;;  %s3015_s3 = inlined_call_operand.vmem [shape: f32[16,13,128], index: 3, kind: output, shape index: {}]  }
   0x1   :  { %1684 = vmatprep.subr.bf16.mxu1 %v1955_v0  ;;  %v142_v1 = vld [vmem:[%s3012_s1] sm:$0xff]  ;;  %v143_v2 = vld [vmem:[%s3012_s1 + $0x8] sm:$0xff]  ;;  %v144_v3 = vld [vmem:[%s3012_s1 + $0x10] sm:$0xff]  ;;  %1732 = vmatprep.subr.bf16.mxu0 %v1955_v0  ;;  %vm1038_vm3 = vcmask 1044480  }
   0x2   :  { %v1685_v4 = vpack.c.bf16 %v143_v2, %v142_v1  ;;  %v145_v5 = vld [vmem:[%s3012_s1 + $0x18] sm:$0xff]  ;;  %v146_v7 = vld [vmem:[%s3012_s1 + $0x20] sm:$0xff]  ;;  %v147_v8 = vld [vmem:[%s3012_s1 + $0x28] sm:$0xff] }
   0x3   :  { %v1688_v6 = vpack.c.bf16 %v145_v5, %v144_v3  ;;  %v174_v9 = vld [vmem:[%s3012_s1 + $0x100] sm:$0xff]  ;;  %v175_v10 = vld [vmem:[%s3012_s1 + $0x108] sm:$0xff]  ;;  %v176_v12 = vld [vmem:[%s3012_s1 + $0x110] sm:$0xff]  ;;  %v1691_v14 = vpack.c.bf16 %v147_v8, %v146_v7 }
   0x4   :  { %1686 = vmatpush1.bf16.msra.mxu1 %v1685_v4  ;;  %v1733_v11 = vpack.c.bf16 %v175_v10, %v174_v9  ;;  %v177_v13 = vld [vmem:[%s3012_s1 + $0x118] sm:$0xff]  ;;  %v148_v15 = vld [vmem:[%s3012_s1 + $0x30] sm:$0xff]  ;;  %v178_v18 = vld [vmem:[%s3012_s1 + $0x120] sm:$0xff] }
   0x5   :  { %1687 = vmatprep.subr.bf16.mxu1 %v1955_v0  ;;  %v149_v16 = vld [vmem:[%s3012_s1 + $0x38] sm:$0xff]  ;;  %v1736_v17 = vpack.c.bf16 %v177_v13, %v176_v12  ;;  %v179_v19 = vld [vmem:[%s3012_s1 + $0x128] sm:$0xff]  ;;  %v150_v21 = vld [vmem:[%s3012_s1 + $0x40] sm:$0xff] }
   0x6   :  { %1734 = vmatpush1.bf16.msra.mxu0 %v1733_v11  ;;  %v1694_v20 = vpack.c.bf16 %v149_v16, %v148_v15  ;;  %v151_v22 = vld [vmem:[%s3012_s1 + $0x48] sm:$0xff]  ;;  %v1739_v23 = vpack.c.bf16 %v179_v19, %v178_v18  ;;  %v180_v24 = vld [vmem:[%s3012_s1 + $0x130] sm:$0xff]  ;;  %v181_v25 = vld [vmem:[%s3012_s1 + $0x138] sm:$0xff] }
   0x7   :  { %1735 = vmatprep.subr.bf16.mxu0 %v1955_v0  ;;  %v1697_v26 = vpack.c.bf16 %v151_v22, %v150_v21  ;;  %v152_v27 = vld [vmem:[%s3012_s1 + $0x50] sm:$0xff]  ;;  %v153_v28 = vld [vmem:[%s3012_s1 + $0x58] sm:$0xff]  ;;  %v1742_v29 = vpack.c.bf16 %v181_v25, %v180_v24  ;;  %v182_v30 = vld [vmem:[%s3012_s1 + $0x140] sm:$0xff] }
   0x8   :  { %1689 = vmatpush1.bf16.msra.mxu1 %v1688_v6  ;;  %v183_v31 = vld [vmem:[%s3012_s1 + $0x148] sm:$0xff]  ;;  %v17_v33 = vld [vmem:[%s3013_s0 + $0x18] sm:$0xff]  ;;  %v1700_v34 = vpack.c.bf16 %v153_v28, %v152_v27  ;;  %v154_v35 = vld [vmem:[%s3012_s1 + $0x60] sm:$0xff] }
   0x9   :  { %1690 = vmatprep.subr.bf16.mxu1 %v1955_v0  ;;  %v15_v32 = vld [vmem:[%s3013_s0 + $0x8] sm:$0xff]  ;;  %1652 = vmatprep.mubr.msk.f32.mxu0 %vm201_vm0, %v17_v33  ;;  %v1745_v37 = vpack.c.bf16 %v183_v31, %v182_v30  ;;  %v184_v38 = vld [vmem:[%s3012_s1 + $0x150] sm:$0xff]  ;;  %v185_v39 = vld [vmem:[%s3012_s1 + $0x158] sm:$0xff] }
   0xa   :  { %1737 = vmatpush1.bf16.msra.mxu0 %v1736_v17  ;;  %362 = vmatprep.mubr.f32.mxu1 %v15_v32  ;;  %v155_v36 = vld [vmem:[%s3012_s1 + $0x68] sm:$0xff]  ;;  %v156_v41 = vld [vmem:[%s3012_s1 + $0x70] sm:$0xff]  ;;  %v157_v42 = vld [vmem:[%s3012_s1 + $0x78] sm:$0xff]  ;;  %v1748_v43 = vpack.c.bf16 %v185_v39, %v184_v38 }
   0xb   :  { %1738 = vmatprep.subr.bf16.mxu0 %v1955_v0  ;;  %v1703_v40 = vpack.c.bf16 %v155_v36, %v154_v35  ;;  %v186_v44 = vld [vmem:[%s3012_s1 + $0x160] sm:$0xff]  ;;  %v187_v45 = vld [vmem:[%s3012_s1 + $0x168] sm:$0xff]  ;;  %v1706_v46 = vpack.c.bf16 %v157_v42, %v156_v41  ;;  %v188_v50 = vld [vmem:[%s3012_s1 + $0x170] sm:$0xff] }
   0xc   :  { %1692 = vmatpush1.bf16.msra.mxu1 %v1691_v14  ;;  %v158_v47 = vld [vmem:[%s3012_s1 + $0x80] sm:$0xff]  ;;  %v159_v48 = vld [vmem:[%s3012_s1 + $0x88] sm:$0xff]  ;;  %v1751_v49 = vpack.c.bf16 %v187_v45, %v186_v44  ;;  %v189_v51 = vld [vmem:[%s3012_s1 + $0x178] sm:$0xff] }
   0xd   :  { %1693 = vmatprep.subr.bf16.mxu1 %v1955_v0  ;;  %v1709_v52 = vpack.c.bf16 %v159_v48, %v158_v47  ;;  %v160_v53 = vld [vmem:[%s3012_s1 + $0x90] sm:$0xff]  ;;  %v161_v54 = vld [vmem:[%s3012_s1 + $0x98] sm:$0xff]  ;;  %v1754_v55 = vpack.c.bf16 %v189_v51, %v188_v50  ;;  %v190_v56 = vld [vmem:[%s3012_s1 + $0x180] sm:$0xff] }
   0xe   :  { %1740 = vmatpush1.bf16.msra.mxu0 %v1739_v23  ;;  %v191_v57 = vld [vmem:[%s3012_s1 + $0x188] sm:$0xff]  ;;  %v1712_v58 = vpack.c.bf16 %v161_v54, %v160_v53  ;;  %v162_v59 = vld [vmem:[%s3012_s1 + $0xa0] sm:$0xff]  ;;  %v192_v62 = vld [vmem:[%s3012_s1 + $0x190] sm:$0xff] }
   0xf   :  { %1741 = vmatprep.subr.bf16.mxu0 %v1955_v0  ;;  %v163_v60 = vld [vmem:[%s3012_s1 + $0xa8] sm:$0xff]  ;;  %v1757_v61 = vpack.c.bf16 %v191_v57, %v190_v56  ;;  %v193_v63 = vld [vmem:[%s3012_s1 + $0x198] sm:$0xff]  ;;  %v164_v2 = vld [vmem:[%s3012_s1 + $0xb0] sm:$0xff] }
  0x10   :  { %1695 = vmatpush1.bf16.msra.mxu1 %v1694_v20  ;;  %v1715_v1 = vpack.c.bf16 %v163_v60, %v162_v59  ;;  %v165_v3 = vld [vmem:[%s3012_s1 + $0xb8] sm:$0xff]  ;;  %v1760_v4 = vpack.c.bf16 %v193_v63, %v192_v62  ;;  %v166_v6 = vld [vmem:[%s3012_s1 + $0xc0] sm:$0xff]  ;;  %v167_v7 = vld [vmem:[%s3012_s1 + $0xc8] sm:$0xff] }
  0x11   :  { %1696 = vmatprep.subr.bf16.mxu1 %v1955_v0  ;;  %v1718_v5 = vpack.c.bf16 %v165_v3, %v164_v2  ;;  %v16_v8 = vld [vmem:[%s3013_s0 + $0x10] sm:$0xff]  ;;  %v21_v9 = vld [vmem:[%s3013_s0 + $0x38] sm:$0xff]  ;;  %v1721_v10 = vpack.c.bf16 %v167_v7, %v166_v6  ;;  %v170_v16 = vld [vmem:[%s3012_s1 + $0xe0] sm:$0xff] }
  0x12   :  { %1743 = vmatpush1.bf16.msra.mxu0 %v1742_v29  ;;  %v168_v11 = vld [vmem:[%s3012_s1 + $0xd0] sm:$0xff]  ;;  %v169_v12 = vld [vmem:[%s3012_s1 + $0xd8] sm:$0xff]  ;;  %v171_v17 = vld [vmem:[%s3012_s1 + $0xe8] sm:$0xff] }
  0x13   :  { %1744 = vmatprep.subr.bf16.mxu0 %v1955_v0  ;;  %v20_v13 = vld [vmem:[%s3013_s0 + $0x30] sm:$0xff]  ;;  %v25_v14 = vld [vmem:[%s3013_s0 + $0x58] sm:$0xff]  ;;  %v1724_v15 = vpack.c.bf16 %v169_v12, %v168_v11  ;;  %v1727_v20 = vpack.c.bf16 %v171_v17, %v170_v16  ;;  %v14_v28 = vld [vmem:[%s3013_s0] sm:$0xff] }
  0x14   :  { %1698 = vmatpush1.bf16.msra.mxu1 %v1697_v26  ;;  %v24_v18 = vld [vmem:[%s3013_s0 + $0x50] sm:$0xff]  ;;  %v29_v19 = vld [vmem:[%s3013_s0 + $0x78] sm:$0xff]  ;;  %v18_v31 = vld [vmem:[%s3013_s0 + $0x20] sm:$0xff] }
  0x15   :  { %1699 = vmatprep.subr.bf16.mxu1 %v1955_v0  ;;  %v172_v21 = vld [vmem:[%s3012_s1 + $0xf0] sm:$0xff]  ;;  %v173_v22 = vld [vmem:[%s3012_s1 + $0xf8] sm:$0xff]  ;;  %v23_v32 = vld [vmem:[%s3013_s0 + $0x48] sm:$0xff] }
  0x16   :  { %1746 = vmatpush1.bf16.msra.mxu0 %v1745_v37  ;;  %v28_v23 = vld [vmem:[%s3013_s0 + $0x70] sm:$0xff]  ;;  %v33_v24 = vld [vmem:[%s3013_s0 + $0x98] sm:$0xff]  ;;  %v1730_v25 = vpack.c.bf16 %v173_v22, %v172_v21  ;;  %v22_v35 = vld [vmem:[%s3013_s0 + $0x40] sm:$0xff] }
  0x17   :  { %1747 = vmatprep.subr.bf16.mxu0 %v1955_v0  ;;  %v32_v26 = vld [vmem:[%s3013_s0 + $0x90] sm:$0xff]  ;;  %v37_v27 = vld [vmem:[%s3013_s0 + $0xb8] sm:$0xff]  ;;  %v27_v36 = vld [vmem:[%s3013_s0 + $0x68] sm:$0xff] }
  0x18   :  { %1701 = vmatpush1.bf16.msra.mxu1 %v1700_v34  ;;  %v36_v29 = vld [vmem:[%s3013_s0 + $0xb0] sm:$0xff]  ;;  %v41_v30 = vld [vmem:[%s3013_s0 + $0xd8] sm:$0xff]  ;;  %v26_v39 = vld [vmem:[%s3013_s0 + $0x60] sm:$0xff] }
  0x19   :  { %1702 = vmatprep.subr.bf16.mxu1 %v1955_v0  ;;  %v40_v33 = vld [vmem:[%s3013_s0 + $0xd0] sm:$0xff]  ;;  %v45_v34 = vld [vmem:[%s3013_s0 + $0xf8] sm:$0xff]  ;;  %v35_v44 = vld [vmem:[%s3013_s0 + $0xa8] sm:$0xff] }
  0x1a   :  { %1749 = vmatpush1.bf16.msra.mxu0 %v1748_v43  ;;  %v44_v37 = vld [vmem:[%s3013_s0 + $0xf0] sm:$0xff]  ;;  %v49_v38 = vld [vmem:[%s3013_s0 + $0x118] sm:$0xff]  ;;  %v30_v43 = vld [vmem:[%s3013_s0 + $0x80] sm:$0xff] }
  0x1b   :  { %1750 = vmatprep.subr.bf16.mxu0 %v1955_v0  ;;  %v48_v41 = vld [vmem:[%s3013_s0 + $0x110] sm:$0xff]  ;;  %v53_v42 = vld [vmem:[%s3013_s0 + $0x138] sm:$0xff]  ;;  %v34_v47 = vld [vmem:[%s3013_s0 + $0xa0] sm:$0xff] }
  0x1c   :  { %1704 = vmatpush1.bf16.msra.mxu1 %v1703_v40  ;;  %v31_v40 = vld [vmem:[%s3013_s0 + $0x88] sm:$0xff]  ;;  %v52_v45 = vld [vmem:[%s3013_s0 + $0x130] sm:$0xff]  ;;  %v61_v50 = vld [vmem:[%s3013_s0 + $0x178] sm:$0xff] }
  0x1d   :  { %1705 = vmatprep.subr.bf16.mxu1 %v1955_v0  ;;  %v39_v48 = vld [vmem:[%s3013_s0 + $0xc8] sm:$0xff]  ;;  %v38_v51 = vld [vmem:[%s3013_s0 + $0xc0] sm:$0xff]  ;;  %v60_v53 = vld [vmem:[%s3013_s0 + $0x170] sm:$0xff] }
  0x1e   :  { %1752 = vmatpush1.bf16.msra.mxu0 %v1751_v49  ;;  %v56_v49 = vld [vmem:[%s3013_s0 + $0x150] sm:$0xff]  ;;  %v65_v54 = vld [vmem:[%s3013_s0 + $0x198] sm:$0xff]  ;;  %v47_v56 = vld [vmem:[%s3013_s0 + $0x108] sm:$0xff] }
  0x1f   :  { %1753 = vmatprep.subr.bf16.mxu0 %v1955_v0  ;;  %v64_v57 = vld [vmem:[%s3013_s0 + $0x190] sm:$0xff]  ;;  %v46_v59 = vld [vmem:[%s3013_s0 + $0x100] sm:$0xff]  ;;  %v51_v60 = vld [vmem:[%s3013_s0 + $0x128] sm:$0xff] }
  0x20   :  { %1707 = vmatpush1.bf16.msra.mxu1 %v1706_v46  ;;  %v57_v46 = vld [vmem:[%s3013_s0 + $0x158] sm:$0xff]  ;;  %v50_v63 = vld [vmem:[%s3013_s0 + $0x120] sm:$0xff]  ;;  %v72_v2 = vld [vmem:[%s3013_s0 + $0x1d0] sm:$0xff] }
  0x21   :  { %1708 = vmatprep.subr.bf16.mxu1 %v1955_v0  ;;  %v73_v62 = vld [vmem:[%s3013_s0 + $0x1d8] sm:$0xff]  ;;  %v76_v6 = vld [vmem:[%s3013_s0 + $0x1f0] sm:$0xff]  ;;  %v62_v12 = vld [vmem:[%s3013_s0 + $0x180] sm:$0xff] }
  0x22   :  { %1755 = vmatpush1.bf16.msra.mxu0 %v1754_v55  ;;  %v42_v55 = vld [vmem:[%s3013_s0 + $0xe0] sm:$0xff]  ;;  %v77_v3 = vld [vmem:[%s3013_s0 + $0x1f8] sm:$0xff]  ;;  %v71_v17 = vld [vmem:[%s3013_s0 + $0x1c8] sm:$0xff] }
  0x23   :  { %1756 = vmatprep.subr.bf16.mxu0 %v1955_v0  ;;  %v81_v7 = vld [vmem:[%s3013_s0 + $0x218] sm:$0xff]  ;;  %v66_v16 = vld [vmem:[%s3013_s0 + $0x1a0] sm:$0xff]  ;;  %v75_v21 = vld [vmem:[%s3013_s0 + $0x1e8] sm:$0xff] }
  0x24   :  { %1710 = vmatpush1.bf16.msra.mxu1 %v1709_v52  ;;  %v43_v52 = vld [vmem:[%s3013_s0 + $0xe8] sm:$0xff]  ;;  %v85_v11 = vld [vmem:[%s3013_s0 + $0x238] sm:$0xff]  ;;  %v92_v22 = vld [vmem:[%s3013_s0 + $0x270] sm:$0xff] }
  0x25   :  { %1711 = vmatprep.subr.bf16.mxu1 %v1955_v0 }
  0x26   :  { %1758 = vmatpush1.bf16.msra.mxu0 %v1757_v61  ;;  %v68_v61 = vld [vmem:[%s3013_s0 + $0x1b0] sm:$0xff] }
  0x27   :  { %1759 = vmatprep.subr.bf16.mxu0 %v1955_v0 }
  0x28   :  { %1713 = vmatpush1.bf16.msra.mxu1 %v1712_v58  ;;  %v69_v58 = vld [vmem:[%s3013_s0 + $0x1b8] sm:$0xff] }
  0x29   :  { %1714 = vmatprep.subr.bf16.mxu1 %v1955_v0 }
  0x2a   :  { %1761 = vmatpush1.bf16.msra.mxu0 %v1760_v4  ;;  %v54_v4 = vld [vmem:[%s3013_s0 + $0x140] sm:$0xff] }
  0x2c   :  { %1716 = vmatpush1.bf16.msra.mxu1 %v1715_v1  ;;  %v55_v1 = vld [vmem:[%s3013_s0 + $0x148] sm:$0xff] }
  0x2d   :  { %1717 = vmatprep.subr.bf16.mxu1 %v1955_v0  ;;  %588 = vmatmul.mubr.f32.vlgmr.msra.gmra.mrb[0].mxu0 %v16_v8  ;;  %v58_v8 = vld [vmem:[%s3013_s0 + $0x160] sm:$0xff] }
  0x2e   :  { %1653 = vmatprep.mubr.msk.f32.mxu0 %vm201_vm0, %v21_v9  ;;  %v63_v9 = vld [vmem:[%s3013_s0 + $0x188] sm:$0xff] }
  0x30   :  { %1719 = vmatpush1.bf16.msra.mxu1 %v1718_v5  ;;  %v59_v5 = vld [vmem:[%s3013_s0 + $0x168] sm:$0xff] }
  0x31   :  { %1720 = vmatprep.subr.bf16.mxu1 %v1955_v0  ;;  %593 = vmatmul.mubr.f32.gmra.mrb[2].mxu0 %v20_v13  ;;  %v67_v13 = vld [vmem:[%s3013_s0 + $0x1a8] sm:$0xff] }
  0x32   :  { %1654 = vmatprep.mubr.msk.f32.mxu0 %vm201_vm0, %v25_v14  ;;  %v84_v14 = vld [vmem:[%s3013_s0 + $0x230] sm:$0xff] }
  0x34   :  { %1722 = vmatpush1.bf16.msra.mxu1 %v1721_v10  ;;  %v80_v10 = vld [vmem:[%s3013_s0 + $0x210] sm:$0xff] }
  0x35   :  { %1723 = vmatprep.subr.bf16.mxu1 %v1955_v0  ;;  %598 = vmatmul.mubr.f32.gmra.mrb[4].mxu0 %v24_v18  ;;  %v88_v18 = vld [vmem:[%s3013_s0 + $0x250] sm:$0xff] }
  0x36   :  { %1655 = vmatprep.mubr.msk.f32.mxu0 %vm201_vm0, %v29_v19  ;;  %v93_v19 = vld [vmem:[%s3013_s0 + $0x278] sm:$0xff] }
  0x38   :  { %1725 = vmatpush1.bf16.msra.mxu1 %v1724_v15  ;;  %v89_v15 = vld [vmem:[%s3013_s0 + $0x258] sm:$0xff] }
  0x39   :  { %1726 = vmatprep.subr.bf16.mxu1 %v1955_v0  ;;  %603 = vmatmul.mubr.f32.gmra.mrb[6].mxu0 %v28_v23  ;;  %v97_v23 = vld [vmem:[%s3013_s0 + $0x298] sm:$0xff] }
  0x3a   :  { %1656 = vmatprep.mubr.msk.f32.mxu0 %vm201_vm0, %v33_v24  ;;  %v74_v24 = vld [vmem:[%s3013_s0 + $0x1e0] sm:$0xff] }
  0x3c   :  { %1728 = vmatpush1.bf16.msra.mxu1 %v1727_v20  ;;  %v70_v20 = vld [vmem:[%s3013_s0 + $0x1c0] sm:$0xff] }
  0x3d   :  { %1729 = vmatprep.subr.bf16.mxu1 %v1955_v0  ;;  %608 = vmatmul.mubr.f32.gmra.mrb[8].mxu0 %v32_v26  ;;  %v19_v0 = vld [vmem:[%s3013_s0 + $0x28] sm:$0xff]  ;;  %v96_v26 = vld [vmem:[%s3013_s0 + $0x290] sm:$0xff] }
  0x3e   :  { %1657 = vmatprep.mubr.msk.f32.mxu0 %vm201_vm0, %v37_v27  ;;  %v101_v27 = vld [vmem:[%s3013_s0 + $0x2b8] sm:$0xff] }
  0x40   :  { %1731 = vmatpush1.bf16.msra.mxu1 %v1730_v25  ;;  %v79_v25 = vld [vmem:[%s3013_s0 + $0x208] sm:$0xff] }
  0x41   :  { %613 = vmatmul.mubr.f32.gmra.mrb[10].mxu0 %v36_v29  ;;  %v100_v29 = vld [vmem:[%s3013_s0 + $0x2b0] sm:$0xff] }
  0x42   :  { %1658 = vmatprep.mubr.msk.f32.mxu0 %vm201_vm0, %v41_v30  ;;  %v105_v30 = vld [vmem:[%s3013_s0 + $0x2d8] sm:$0xff] }
  0x43   :  { %363 = vmatmul.mubr.f32.vlgmr.msra.gmra.mrb[0].mxu1 %v14_v28  ;;  %v78_v28 = vld [vmem:[%s3013_s0 + $0x200] sm:$0xff] }
  0x44   :  { %367 = vmatprep.mubr.f32.mxu1 %v19_v0  ;;  %v83_v0 = vld [vmem:[%s3013_s0 + $0x228] sm:$0xff] }
  0x45   :  { %618 = vmatmul.mubr.f32.gmra.mrb[12].mxu0 %v40_v33  ;;  %v104_v33 = vld [vmem:[%s3013_s0 + $0x2d0] sm:$0xff] }
  0x46   :  { %1659 = vmatprep.mubr.msk.f32.mxu0 %vm201_vm0, %v45_v34  ;;  %v109_v34 = vld [vmem:[%s3013_s0 + $0x2f8] sm:$0xff] }
  0x47   :  { %368 = vmatmul.mubr.f32.gmra.mrb[2].mxu1 %v18_v31  ;;  %v82_v31 = vld [vmem:[%s3013_s0 + $0x220] sm:$0xff] }
  0x48   :  { %372 = vmatprep.mubr.f32.mxu1 %v23_v32  ;;  %v87_v32 = vld [vmem:[%s3013_s0 + $0x248] sm:$0xff] }
  0x49   :  { %623 = vmatmul.mubr.f32.gmra.mrb[14].mxu0 %v44_v37  ;;  %v108_v37 = vld [vmem:[%s3013_s0 + $0x2f0] sm:$0xff] }
  0x4a   :  { %1660 = vmatprep.mubr.msk.f32.mxu0 %vm201_vm0, %v49_v38  ;;  %v113_v38 = vld [vmem:[%s3013_s0 + $0x318] sm:$0xff] }
  0x4b   :  { %373 = vmatmul.mubr.f32.gmra.mrb[4].mxu1 %v22_v35  ;;  %v86_v35 = vld [vmem:[%s3013_s0 + $0x240] sm:$0xff] }
  0x4c   :  { %377 = vmatprep.mubr.f32.mxu1 %v27_v36  ;;  %v91_v36 = vld [vmem:[%s3013_s0 + $0x268] sm:$0xff] }
  0x4d   :  { %628 = vmatmul.mubr.f32.gmra.mrb[16].mxu0 %v48_v41  ;;  %v112_v41 = vld [vmem:[%s3013_s0 + $0x310] sm:$0xff] }
  0x4e   :  { %1661 = vmatprep.mubr.msk.f32.mxu0 %vm201_vm0, %v53_v42  ;;  %v117_v42 = vld [vmem:[%s3013_s0 + $0x338] sm:$0xff] }
  0x4f   :  { %378 = vmatmul.mubr.f32.gmra.mrb[6].mxu1 %v26_v39  ;;  %v90_v39 = vld [vmem:[%s3013_s0 + $0x260] sm:$0xff] }
  0x50   :  { %382 = vmatprep.mubr.f32.mxu1 %v31_v40  ;;  %v95_v40 = vld [vmem:[%s3013_s0 + $0x288] sm:$0xff] }
  0x51   :  { %633 = vmatmul.mubr.f32.gmra.mrb[18].mxu0 %v52_v45  ;;  %v116_v45 = vld [vmem:[%s3013_s0 + $0x330] sm:$0xff] }
  0x52   :  { %1662 = vmatprep.mubr.msk.f32.mxu0 %vm201_vm0, %v57_v46  ;;  %v121_v46 = vld [vmem:[%s3013_s0 + $0x358] sm:$0xff] }
  0x53   :  { %383 = vmatmul.mubr.f32.gmra.mrb[8].mxu1 %v30_v43  ;;  %v94_v43 = vld [vmem:[%s3013_s0 + $0x280] sm:$0xff] }
  0x54   :  { %387 = vmatprep.mubr.f32.mxu1 %v35_v44  ;;  %v99_v44 = vld [vmem:[%s3013_s0 + $0x2a8] sm:$0xff] }
  0x55   :  { %638 = vmatmul.mubr.f32.gmra.mrb[20].mxu0 %v56_v49  ;;  %v120_v49 = vld [vmem:[%s3013_s0 + $0x350] sm:$0xff] }
  0x56   :  { %1663 = vmatprep.mubr.msk.f32.mxu0 %vm201_vm0, %v61_v50  ;;  %v125_v50 = vld [vmem:[%s3013_s0 + $0x378] sm:$0xff] }
  0x57   :  { %388 = vmatmul.mubr.f32.gmra.mrb[10].mxu1 %v34_v47  ;;  %v98_v47 = vld [vmem:[%s3013_s0 + $0x2a0] sm:$0xff] }
  0x58   :  { %392 = vmatprep.mubr.f32.mxu1 %v39_v48  ;;  %v103_v48 = vld [vmem:[%s3013_s0 + $0x2c8] sm:$0xff] }
  0x59   :  { %643 = vmatmul.mubr.f32.gmra.mrb[22].mxu0 %v60_v53  ;;  %v124_v53 = vld [vmem:[%s3013_s0 + $0x370] sm:$0xff] }
  0x5a   :  { %1664 = vmatprep.mubr.msk.f32.mxu0 %vm201_vm0, %v65_v54  ;;  %v129_v54 = vld [vmem:[%s3013_s0 + $0x398] sm:$0xff] }
  0x5b   :  { %393 = vmatmul.mubr.f32.gmra.mrb[12].mxu1 %v38_v51  ;;  %v102_v51 = vld [vmem:[%s3013_s0 + $0x2c0] sm:$0xff] }
  0x5c   :  { %397 = vmatprep.mubr.f32.mxu1 %v43_v52  ;;  %v107_v52 = vld [vmem:[%s3013_s0 + $0x2e8] sm:$0xff] }
  0x5d   :  { %648 = vmatmul.mubr.f32.gmra.mrb[24].mxu0 %v64_v57  ;;  %v128_v57 = vld [vmem:[%s3013_s0 + $0x390] sm:$0xff] }
  0x5e   :  { %1665 = vmatprep.mubr.msk.f32.mxu0 %vm201_vm0, %v69_v58  ;;  %v133_v58 = vld [vmem:[%s3013_s0 + $0x3b8] sm:$0xff] }
  0x5f   :  { %398 = vmatmul.mubr.f32.gmra.mrb[14].mxu1 %v42_v55  ;;  %v106_v55 = vld [vmem:[%s3013_s0 + $0x2e0] sm:$0xff] }
  0x60   :  { %402 = vmatprep.mubr.f32.mxu1 %v47_v56  ;;  %v111_v56 = vld [vmem:[%s3013_s0 + $0x308] sm:$0xff] }
  0x61   :  { %653 = vmatmul.mubr.f32.gmra.mrb[26].mxu0 %v68_v61  ;;  %v132_v61 = vld [vmem:[%s3013_s0 + $0x3b0] sm:$0xff] }
  0x62   :  { %1666 = vmatprep.mubr.msk.f32.mxu0 %vm201_vm0, %v73_v62  ;;  %v137_v62 = vld [vmem:[%s3013_s0 + $0x3d8] sm:$0xff] }
  0x63   :  { %403 = vmatmul.mubr.f32.gmra.mrb[16].mxu1 %v46_v59  ;;  %v110_v59 = vld [vmem:[%s3013_s0 + $0x300] sm:$0xff] }
  0x64   :  { %407 = vmatprep.mubr.f32.mxu1 %v51_v60  ;;  %v115_v60 = vld [vmem:[%s3013_s0 + $0x328] sm:$0xff] }
  0x65   :  { %658 = vmatmul.mubr.f32.gmra.mrb[28].mxu0 %v72_v2  ;;  %v136_v2 = vld [vmem:[%s3013_s0 + $0x3d0] sm:$0xff] }
  0x66   :  { %1667 = vmatprep.mubr.msk.f32.mxu0 %vm201_vm0, %v77_v3  ;;  %v141_v3 = vld [vmem:[%s3013_s0 + $0x3f8] sm:$0xff] }
  0x67   :  { %408 = vmatmul.mubr.f32.gmra.mrb[18].mxu1 %v50_v63  ;;  %v114_v63 = vld [vmem:[%s3013_s0 + $0x320] sm:$0xff] }
  0x68   :  { %412 = vmatprep.mubr.f32.mxu1 %v55_v1  ;;  %v119_v1 = vld [vmem:[%s3013_s0 + $0x348] sm:$0xff] }
  0x69   :  { %663 = vmatmul.mubr.f32.gmra.mrb[30].mxu0 %v76_v6  ;;  %v140_v6 = vld [vmem:[%s3013_s0 + $0x3f0] sm:$0xff] }
  0x6a   :  { %1668 = vmatprep.mubr.msk.f32.mxu0 %vm201_vm0, %v81_v7  ;;  %v122_v7 = vld [vmem:[%s3013_s0 + $0x360] sm:$0xff] }
  0x6b   :  { %413 = vmatmul.mubr.f32.gmra.mrb[20].mxu1 %v54_v4  ;;  %v118_v4 = vld [vmem:[%s3013_s0 + $0x340] sm:$0xff] }
  0x6c   :  { %417 = vmatprep.mubr.f32.mxu1 %v59_v5  ;;  %v123_v5 = vld [vmem:[%s3013_s0 + $0x368] sm:$0xff] }
  0x6d   :  { %668 = vmatmul.mubr.f32.gmra.mrb[32].mxu0 %v80_v10  ;;  %v131_v10 = vld [vmem:[%s3013_s0 + $0x3a8] sm:$0xff] }
  0x6e   :  { %1669 = vmatprep.mubr.msk.f32.mxu0 %vm201_vm0, %v85_v11  ;;  %v130_v11 = vld [vmem:[%s3013_s0 + $0x3a0] sm:$0xff] }
  0x6f   :  { %418 = vmatmul.mubr.f32.gmra.mrb[22].mxu1 %v58_v8  ;;  %v127_v8 = vld [vmem:[%s3013_s0 + $0x388] sm:$0xff] }
  0x70   :  { %422 = vmatprep.mubr.f32.mxu1 %v63_v9  ;;  %v126_v9 = vld [vmem:[%s3013_s0 + $0x380] sm:$0xff] }
  0x71   :  { %673 = vmatmul.mubr.f32.gmra.mrb[34].mxu0 %v84_v14  ;;  %v139_v14 = vld [vmem:[%s3013_s0 + $0x3e8] sm:$0xff] }
  0x72   :  { %1670 = vmatprep.mubr.msk.f32.mxu0 %vm201_vm0, %v89_v15  ;;  %v138_v15 = vld [vmem:[%s3013_s0 + $0x3e0] sm:$0xff] }
  0x73   :  { %423 = vmatmul.mubr.f32.gmra.mrb[24].mxu1 %v62_v12  ;;  %v135_v12 = vld [vmem:[%s3013_s0 + $0x3c8] sm:$0xff] }
  0x74   :  { %427 = vmatprep.mubr.f32.mxu1 %v67_v13  ;;  %v134_v13 = vld [vmem:[%s3013_s0 + $0x3c0] sm:$0xff] }
  0x75   :  { %678 = vmatmul.mubr.f32.gmra.mrb[36].mxu0 %v88_v18 }
  0x76   :  { %1671 = vmatprep.mubr.msk.f32.mxu0 %vm201_vm0, %v93_v19 }
  0x77   :  { %428 = vmatmul.mubr.f32.gmra.mrb[26].mxu1 %v66_v16 }
  0x78   :  { %432 = vmatprep.mubr.f32.mxu1 %v71_v17 }
  0x79   :  { %683 = vmatmul.mubr.f32.gmra.mrb[38].mxu0 %v92_v22 }
  0x7a   :  { %1672 = vmatprep.mubr.msk.f32.mxu0 %vm201_vm0, %v97_v23 }
  0x7b   :  { %433 = vmatmul.mubr.f32.gmra.mrb[28].mxu1 %v70_v20 }
  0x7c   :  { %437 = vmatprep.mubr.f32.mxu1 %v75_v21 }
  0x7d   :  { %688 = vmatmul.mubr.f32.gmra.mrb[40].mxu0 %v96_v26 }
  0x7e   :  { %1673 = vmatprep.mubr.msk.f32.mxu0 %vm201_vm0, %v101_v27 }
  0x7f   :  { %438 = vmatmul.mubr.f32.gmra.mrb[30].mxu1 %v74_v24 }
  0x80   :  { %442 = vmatprep.mubr.f32.mxu1 %v79_v25  ;;  %v2577_v25 = vld [vmem:[%s3014_s2] ss:$0 sm:$0xff] }
  0x81   :  { %693 = vmatmul.mubr.f32.gmra.mrb[42].mxu0 %v100_v29 }
  0x82   :  { %1674 = vmatprep.mubr.msk.f32.mxu0 %vm201_vm0, %v105_v30 }
  0x83   :  { %443 = vmatmul.mubr.f32.gmra.mrb[32].mxu1 %v78_v28 }
  0x84   :  { %447 = vmatprep.mubr.f32.mxu1 %v83_v0 }
  0x85   :  { %698 = vmatmul.mubr.f32.gmra.mrb[44].mxu0 %v104_v33 }
  0x86   :  { %1675 = vmatprep.mubr.msk.f32.mxu0 %vm201_vm0, %v109_v34 }
  0x87   :  { %448 = vmatmul.mubr.f32.gmra.mrb[34].mxu1 %v82_v31 }
  0x88   :  { %452 = vmatprep.mubr.f32.mxu1 %v87_v32 }
  0x89   :  { %703 = vmatmul.mubr.f32.gmra.mrb[46].mxu0 %v108_v37 }
  0x8a   :  { %1676 = vmatprep.mubr.msk.f32.mxu0 %vm201_vm0, %v113_v38 }
  0x8b   :  { %453 = vmatmul.mubr.f32.gmra.mrb[36].mxu1 %v86_v35 }
  0x8c   :  { %457 = vmatprep.mubr.f32.mxu1 %v91_v36 }
  0x8d   :  { %708 = vmatmul.mubr.f32.gmra.mrb[48].mxu0 %v112_v41 }
  0x8e   :  { %1677 = vmatprep.mubr.msk.f32.mxu0 %vm201_vm0, %v117_v42 }
  0x8f   :  { %458 = vmatmul.mubr.f32.gmra.mrb[38].mxu1 %v90_v39 }
  0x90   :  { %462 = vmatprep.mubr.f32.mxu1 %v95_v40 }
  0x91   :  { %713 = vmatmul.mubr.f32.gmra.mrb[50].mxu0 %v116_v45 }
  0x92   :  { %1678 = vmatprep.mubr.msk.f32.mxu0 %vm201_vm0, %v121_v46 }
  0x93   :  { %463 = vmatmul.mubr.f32.gmra.mrb[40].mxu1 %v94_v43 }
  0x94   :  { %467 = vmatprep.mubr.f32.mxu1 %v99_v44 }
  0x95   :  { %718 = vmatmul.mubr.f32.gmra.mrb[52].mxu0 %v120_v49 }
  0x96   :  { %1679 = vmatprep.mubr.msk.f32.mxu0 %vm201_vm0, %v125_v50 }
  0x97   :  { %468 = vmatmul.mubr.f32.gmra.mrb[42].mxu1 %v98_v47 }
  0x98   :  { %472 = vmatprep.mubr.f32.mxu1 %v103_v48 }
  0x99   :  { %723 = vmatmul.mubr.f32.gmra.mrb[54].mxu0 %v124_v53 }
  0x9a   :  { %1680 = vmatprep.mubr.msk.f32.mxu0 %vm201_vm0, %v129_v54 }
  0x9b   :  { %473 = vmatmul.mubr.f32.gmra.mrb[44].mxu1 %v102_v51 }
  0x9c   :  { %477 = vmatprep.mubr.f32.mxu1 %v107_v52 }
  0x9d   :  { %728 = vmatmul.mubr.f32.gmra.mrb[56].mxu0 %v128_v57 }
  0x9e   :  { %1681 = vmatprep.mubr.msk.f32.mxu0 %vm201_vm0, %v133_v58 }
  0x9f   :  { %478 = vmatmul.mubr.f32.gmra.mrb[46].mxu1 %v106_v55 }
  0xa0   :  { %482 = vmatprep.mubr.f32.mxu1 %v111_v56 }
  0xa1   :  { %733 = vmatmul.mubr.f32.gmra.mrb[58].mxu0 %v132_v61 }
  0xa2   :  { %1682 = vmatprep.mubr.msk.f32.mxu0 %vm201_vm0, %v137_v62 }
  0xa3   :  { %483 = vmatmul.mubr.f32.gmra.mrb[48].mxu1 %v110_v59 }
  0xa4   :  { %487 = vmatprep.mubr.f32.mxu1 %v115_v60 }
  0xa5   :  { %738 = vmatmul.mubr.f32.gmra.mrb[60].mxu0 %v136_v2 }
  0xa6   :  { %1683 = vmatprep.mubr.msk.f32.mxu0 %vm201_vm0, %v141_v3 }
  0xa7   :  { %488 = vmatmul.mubr.f32.gmra.mrb[50].mxu1 %v114_v63 }
  0xa8   :  { %492 = vmatprep.mubr.f32.mxu1 %v119_v1 }
  0xa9   :  { %743 = vmatmul.mubr.f32.gmra.mrb[62].mxu0 %v140_v6 }
  0xab   :  { %493 = vmatmul.mubr.f32.gmra.mrb[52].mxu1 %v118_v4 }
  0xac   :  { %497 = vmatprep.mubr.f32.mxu1 %v123_v5 }
  0xaf   :  { %498 = vmatmul.mubr.f32.gmra.mrb[54].mxu1 %v122_v7 }
  0xb0   :  { %502 = vmatprep.mubr.f32.mxu1 %v127_v8 }
  0xb3   :  { %503 = vmatmul.mubr.f32.gmra.mrb[56].mxu1 %v126_v9 }
  0xb4   :  { %507 = vmatprep.mubr.f32.mxu1 %v131_v10 }
  0xb7   :  { %508 = vmatmul.mubr.f32.gmra.mrb[58].mxu1 %v130_v11 }
  0xb8   :  { %512 = vmatprep.mubr.f32.mxu1 %v135_v12 }
  0xbb   :  { %513 = vmatmul.mubr.f32.gmra.mrb[60].mxu1 %v134_v13 }
  0xbc   :  { %517 = vmatprep.mubr.f32.mxu1 %v139_v14 }
  0xbf   :  { %518 = vmatmul.mubr.f32.gmra.mrb[62].mxu1 %v138_v15 }
 0x100   :  { %v589_v16 = vpop.f32.mrb[0].mxu0 }
 0x101   :  { %v591_v17 = vpop.f32.mrb[1].mxu0 }
 0x104   :  { %v594_v18 = vpop.f32.mrb[2].mxu0 }
 0x105   :  { %v596_v19 = vpop.f32.mrb[3].mxu0 }
 0x108   :  { %v599_v20 = vpop.f32.mrb[4].mxu0 }
 0x109   :  { %v601_v21 = vpop.f32.mrb[5].mxu0 }
 0x10c   :  { %v604_v22 = vpop.f32.mrb[6].mxu0 }
 0x10d   :  { %v606_v23 = vpop.f32.mrb[7].mxu0 }
 0x110   :  { %v609_v24 = vpop.f32.mrb[8].mxu0 }
 0x111   :  { %v611_v26 = vpop.f32.mrb[9].mxu0 }
 0x114   :  { %v2580_v29 = vpop.f32.mrb[10].mxu0 }
 0x115   :  { %v616_v30 = vpop.f32.mrb[11].mxu0 }
 0x116   :  { %v364_v27 = vpop.f32.mrb[0].mxu1 }
 0x117   :  { %v365_v28 = vadd.f32 %v2577_v25, %v364_v27  ;;  %v366_v0 = vpop.f32.mrb[1].mxu1 }
 0x118   :  { %v2583_v35 = vpop.f32.mrb[12].mxu0 }
 0x119   :  { %v590_v31 = vadd.f32 %v589_v16, %v365_v28  ;;  %v621_v37 = vpop.f32.mrb[13].mxu0 }
 0x11a   :  { %v369_v32 = vpop.f32.mrb[2].mxu1 }
 0x11b   :  { %v370_v33 = vadd.f32 %v2577_v25, %v369_v32  ;;  %v371_v34 = vpop.f32.mrb[3].mxu1  ;;  %v748_v36 = vmax.f32 %v590_v31, 0.0 }
 0x11c   :  { %v2586_v43 = vpop.f32.mrb[14].mxu0 }
 0x11d   :  { %v595_v38 = vadd.f32 %v594_v18, %v370_v33  ;;  %v813_v44 = vrot.slane %v748_v36, 1  ;;  %v926_v45 = vrot.slane %v748_v36, 2  ;;  %v626_v46 = vpop.f32.mrb[15].mxu0  ;;  %v1039_v52 = vrot.slane %v748_v36, 3 }
 0x11e   :  { %v374_v39 = vpop.f32.mrb[4].mxu1 }
 0x11f   :  { %v749_v40 = vmax.f32 %v595_v38, 0.0  ;;  %v375_v41 = vadd.f32 %v2577_v25, %v374_v39  ;;  %v376_v42 = vpop.f32.mrb[5].mxu1 }
 0x120   :  { %v2591_v57 = vpop.f32.mrb[16].mxu0 }
 0x121   :  { %v814_v47 = vrot.slane %v749_v40, 1  ;;  %v927_v48 = vrot.slane %v749_v40, 2  ;;  %v600_v49 = vadd.f32 %v599_v20, %v375_v41  ;;  %v1040_v50 = vrot.slane %v749_v40, 3  ;;  %v631_v62 = vpop.f32.mrb[17].mxu0 }
 0x122   :  { %v379_v51 = vpop.f32.mrb[6].mxu1 }
 0x123   :  { %v380_v53 = vadd.f32 %v2577_v25, %v379_v51  ;;  %v381_v54 = vpop.f32.mrb[7].mxu1  ;;  %v815_v55 = vsel %vm812_vm1, %v813_v44, %v814_v47  ;;  %v928_v56 = vsel %vm925_vm2, %v926_v45, %v927_v48  ;;  %v750_v58 = vmax.f32 %v600_v49, 0.0 }
 0x124   :  { %v893_v59 = vmax.f32 %v748_v36, %v815_v55  ;;  %v1041_v60 = vsel %vm1038_vm3, %v1039_v52, %v1040_v50  ;;  %v894_v61 = vmax.f32 %v749_v40, %v814_v47  ;;  %v2595_v7 = vpop.f32.mrb[18].mxu0 }
 0x125   :  { %v605_v63 = vadd.f32 %v604_v22, %v380_v53  ;;  %v816_v8 = vrot.slane %v750_v58, 1  ;;  %v929_v9 = vrot.slane %v750_v58, 2  ;;  %v636_v12 = vpop.f32.mrb[19].mxu0  ;;  %v1042_v19 = vrot.slane %v750_v58, 3 }
 0x126   :  { %v384_v1 = vpop.f32.mrb[8].mxu1  ;;  %v1006_v2 = vmax.f32 %v893_v59, %v928_v56  ;;  %v1007_v3 = vmax.f32 %v894_v61, %v927_v48 }
 0x127   :  { %v751_v4 = vmax.f32 %v605_v63, 0.0  ;;  %v385_v5 = vadd.f32 %v2577_v25, %v384_v1  ;;  %v386_v6 = vpop.f32.mrb[9].mxu1 }
 0x128   :  { %v2597_v10 = vmax.f32 %v1006_v2, %v1041_v60  ;;  %v2599_v11 = vmax.f32 %v1007_v3, %v1040_v50  ;;  %v2608_v27 = vpop.f32.mrb[20].mxu0 }
 0x129   :  { %v817_v13 = vrot.slane %v751_v4, 1  ;;  %v930_v14 = vrot.slane %v751_v4, 2  ;;  %v610_v15 = vadd.f32 %v609_v24, %v385_v5  ;;  %v1043_v16 = vrot.slane %v751_v4, 3  ;;  %v641_v31 = vpop.f32.mrb[21].mxu0 }
 0x12a   :  { %v389_v17 = vpop.f32.mrb[10].mxu1  ;;  %v1151_v18 = vmul.f32 %v2597_v10, %v2597_v10  ;;  %v1152_v22 = vmul.f32 %v2599_v11, %v2599_v11 }
 0x12b   :  { %v390_v20 = vadd.f32 %v2577_v25, %v389_v17  ;;  %v391_v21 = vpop.f32.mrb[11].mxu1  ;;  %v818_v23 = vsel %vm812_vm1, %v816_v8, %v817_v13  ;;  %v931_v26 = vsel %vm925_vm2, %v929_v9, %v930_v14  ;;  %v752_v28 = vmax.f32 %v610_v15, 0.0 }
 0x12c   :  { %1183 = vadd.xlane.f32.xlu0 %v1151_v18  ;;  %v895_v24 = vmax.f32 %v750_v58, %v818_v23  ;;  %v1044_v0 = vsel %vm1038_vm3, %v1042_v19, %v1043_v16  ;;  %v896_v30 = vmax.f32 %v751_v4, %v817_v13  ;;  %v1185_v40 = vsel %vm1038_vm3, %v1152_v22, 0.0  ;;  %v2614_v41 = vpop.f32.mrb[22].mxu0 }
 0x12d   :  { %v615_v32 = vadd.f32 %v2580_v29, %v390_v20  ;;  %v819_v42 = vrot.slane %v752_v28, 1  ;;  %v646_v46 = vpop.f32.mrb[23].mxu0  ;;  %v932_v50 = vrot.slane %v752_v28, 2  ;;  %v1045_v53 = vrot.slane %v752_v28, 3 }
 0x12e   :  { %v394_v33 = vpop.f32.mrb[12].mxu1  ;;  %v1008_v34 = vmax.f32 %v895_v24, %v931_v26  ;;  %v1009_v36 = vmax.f32 %v896_v30, %v930_v14 }
 0x12f   :  { %v753_v37 = vmax.f32 %v615_v32, 0.0  ;;  %v395_v38 = vadd.f32 %v2577_v25, %v394_v33  ;;  %v396_v39 = vpop.f32.mrb[13].mxu1 }
 0x130   :  { %1186 = vadd.xlane.f32.xlu0 %v1185_v40  ;;  %v2616_v44 = vmax.f32 %v1008_v34, %v1044_v0  ;;  %v2618_v45 = vmax.f32 %v1009_v36, %v1043_v16  ;;  %v2627_v60 = vpop.f32.mrb[24].mxu0 }
 0x131   :  { %v820_v47 = vrot.slane %v753_v37, 1  ;;  %v620_v29 = vadd.f32 %v2583_v35, %v395_v38  ;;  %v933_v48 = vrot.slane %v753_v37, 2  ;;  %v1046_v49 = vrot.slane %v753_v37, 3  ;;  %v651_v1 = vpop.f32.mrb[25].mxu0 }
 0x132   :  { %v399_v51 = vpop.f32.mrb[14].mxu1  ;;  %v1153_v52 = vmul.f32 %v2616_v44, %v2616_v44  ;;  %v1154_v56 = vmul.f32 %v2618_v45, %v2618_v45 }
 0x133   :  { %v400_v54 = vadd.f32 %v2577_v25, %v399_v51  ;;  %v401_v55 = vpop.f32.mrb[15].mxu1  ;;  %v898_v58 = vmax.f32 %v753_v37, %v820_v47  ;;  %v821_v59 = vsel %vm812_vm1, %v819_v42, %v820_v47  ;;  %v754_v35 = vmax.f32 %v620_v29, 0.0 }
 0x134   :  { %1188 = vadd.xlane.f32.xlu1 %v1153_v52  ;;  %v897_v61 = vmax.f32 %v752_v28, %v821_v59  ;;  %v934_v62 = vsel %vm925_vm2, %v932_v50, %v933_v48  ;;  %v1047_v63 = vsel %vm1038_vm3, %v1045_v53, %v1046_v49  ;;  %v1190_v12 = vsel %vm1038_vm3, %v1154_v56, 0.0  ;;  %v2636_v14 = vpop.f32.mrb[26].mxu0 }
 0x135   :  { %v625_v2 = vadd.f32 %v2586_v43, %v400_v54  ;;  %v1011_v3 = vmax.f32 %v898_v58, %v933_v48  ;;  %v822_v15 = vrot.slane %v754_v35, 1  ;;  %v656_v17 = vpop.f32.mrb[27].mxu0  ;;  %v935_v21 = vrot.slane %v754_v35, 2 }
 0x136   :  { %v404_v4 = vpop.f32.mrb[16].mxu1  ;;  %v1010_v5 = vmax.f32 %v897_v61, %v934_v62  ;;  %v1048_v28 = vrot.slane %v754_v35, 3 }
 0x137   :  { %v755_v6 = vmax.f32 %v625_v2, 0.0  ;;  %v405_v8 = vadd.f32 %v2577_v25, %v404_v4  ;;  %v406_v9 = vpop.f32.mrb[17].mxu1  ;;  %v2634_v13 = vmax.f32 %v1011_v3, %v1046_v49 }
 0x138   :  { %1191 = vadd.xlane.f32.xlu1 %v1190_v12  ;;  %v2638_v16 = vmax.f32 %v1010_v5, %v1047_v63  ;;  %v2647_v32 = vpop.f32.mrb[28].mxu0 }
 0x139   :  { %v823_v18 = vrot.slane %v755_v6, 1  ;;  %v630_v43 = vadd.f32 %v2591_v57, %v405_v8  ;;  %v1156_v19 = vmul.f32 %v2634_v13, %v2634_v13  ;;  %v936_v20 = vrot.slane %v755_v6, 2  ;;  %v661_v37 = vpop.f32.mrb[29].mxu0 }
 0x13a   :  { %v409_v22 = vpop.f32.mrb[18].mxu1  ;;  %v1155_v23 = vmul.f32 %v2638_v16, %v2638_v16  ;;  %v1049_v26 = vrot.slane %v755_v6, 3 }
 0x13b   :  { %v410_v24 = vadd.f32 %v2577_v25, %v409_v22  ;;  %v411_v0 = vpop.f32.mrb[19].mxu1  ;;  %v1195_v30 = vsel %vm1038_vm3, %v1156_v19, 0.0  ;;  %v900_v31 = vmax.f32 %v755_v6, %v823_v18  ;;  %v756_v57 = vmax.f32 %v630_v43, 0.0 }
 0x13c   :  { %1196 = vadd.xlane.f32.xlu1 %v1195_v30  ;;  %1193 = vadd.xlane.f32.xlu0 %v1155_v23  ;;  %v824_v33 = vsel %vm812_vm1, %v822_v15, %v823_v18  ;;  %v937_v34 = vsel %vm925_vm2, %v935_v21, %v936_v20  ;;  %v1050_v36 = vsel %vm1038_vm3, %v1048_v28, %v1049_v26  ;;  %v2656_v49 = vpop.f32.mrb[30].mxu0 }
 0x13d   :  { %v635_v38 = vadd.f32 %v2595_v7, %v410_v24  ;;  %v1013_v39 = vmax.f32 %v900_v31, %v936_v20  ;;  %v899_v42 = vmax.f32 %v754_v35, %v824_v33  ;;  %v825_v50 = vrot.slane %v756_v57, 1  ;;  %v666_v52 = vpop.f32.mrb[31].mxu0 }
 0x13e   :  { %v414_v40 = vpop.f32.mrb[20].mxu1  ;;  %v938_v56 = vrot.slane %v756_v57, 2  ;;  %v1051_v61 = vrot.slane %v756_v57, 3 }
 0x13f   :  { %v757_v46 = vmax.f32 %v635_v38, 0.0  ;;  %v415_v47 = vadd.f32 %v2577_v25, %v414_v40  ;;  %v416_v29 = vpop.f32.mrb[21].mxu1  ;;  %v2654_v48 = vmax.f32 %v1013_v39, %v1049_v26  ;;  %v1012_v51 = vmax.f32 %v899_v42, %v937_v34 }
 0x140   :  { %v2665_v4 = vpop.f32.mrb[32].mxu0 }
 0x141   :  { %v826_v53 = vrot.slane %v757_v46, 1  ;;  %v640_v54 = vadd.f32 %v2608_v27, %v415_v47  ;;  %v1158_v7 = vmul.f32 %v2654_v48, %v2654_v48  ;;  %v939_v55 = vrot.slane %v757_v46, 2  ;;  %v671_v9 = vpop.f32.mrb[33].mxu0 }
 0x142   :  { %v419_v58 = vpop.f32.mrb[22].mxu1  ;;  %v2661_v59 = vmax.f32 %v1012_v51, %v1050_v36  ;;  %v1052_v35 = vrot.slane %v757_v46, 3 }
 0x143   :  { %v758_v62 = vmax.f32 %v640_v54, 0.0  ;;  %v420_v63 = vadd.f32 %v2577_v25, %v419_v58  ;;  %v421_v1 = vpop.f32.mrb[23].mxu1  ;;  %v1200_v2 = vsel %vm1038_vm3, %v1158_v7, 0.0  ;;  %v902_v3 = vmax.f32 %v757_v46, %v826_v53 }
 0x144   :  { %1201 = vadd.xlane.f32.xlu1 %v1200_v2  ;;  %v1157_v27 = vmul.f32 %v2661_v59, %v2661_v59  ;;  %v827_v5 = vsel %vm812_vm1, %v825_v50, %v826_v53  ;;  %v940_v6 = vsel %vm925_vm2, %v938_v56, %v939_v55  ;;  %v1053_v8 = vsel %vm1038_vm3, %v1051_v61, %v1052_v35  ;;  %v2676_v22 = vpop.f32.mrb[34].mxu0 }
 0x145   :  { %v645_v12 = vadd.f32 %v2614_v41, %v420_v63  ;;  %v1015_v15 = vmax.f32 %v902_v3, %v939_v55  ;;  %v901_v18 = vmax.f32 %v756_v57, %v827_v5  ;;  %v828_v23 = vrot.slane %v758_v62, 1  ;;  %v676_v28 = vpop.f32.mrb[35].mxu0 }
 0x146   :  { %1198 = vadd.xlane.f32.xlu0 %v1157_v27  ;;  %v424_v17 = vpop.f32.mrb[24].mxu1  ;;  %v941_v31 = vrot.slane %v758_v62, 2  ;;  %v1054_v36 = vrot.slane %v758_v62, 3 }
 0x147   :  { %v759_v43 = vmax.f32 %v645_v12, 0.0  ;;  %v425_v19 = vadd.f32 %v2577_v25, %v424_v17  ;;  %v426_v20 = vpop.f32.mrb[25].mxu1  ;;  %v2674_v21 = vmax.f32 %v1015_v15, %v1052_v35  ;;  %v1014_v26 = vmax.f32 %v901_v18, %v940_v6 }
 0x148   :  { %v2685_v46 = vpop.f32.mrb[36].mxu0 }
 0x149   :  { %v829_v24 = vrot.slane %v759_v43, 1  ;;  %v650_v0 = vadd.f32 %v2627_v60, %v425_v19  ;;  %v1160_v41 = vmul.f32 %v2674_v21, %v2674_v21  ;;  %v942_v30 = vrot.slane %v759_v43, 2  ;;  %v681_v51 = vpop.f32.mrb[37].mxu0 }
 0x14a   :  { %v429_v57 = vpop.f32.mrb[26].mxu1  ;;  %v2681_v33 = vmax.f32 %v1014_v26, %v1053_v8  ;;  %v1055_v34 = vrot.slane %v759_v43, 3 }
 0x14b   :  { %v760_v37 = vmax.f32 %v650_v0, 0.0  ;;  %v430_v38 = vadd.f32 %v2577_v25, %v429_v57  ;;  %v431_v39 = vpop.f32.mrb[27].mxu1  ;;  %v1205_v40 = vsel %vm1038_vm3, %v1160_v41, 0.0  ;;  %v904_v42 = vmax.f32 %v759_v43, %v829_v24 }
 0x14c   :  { %1206 = vadd.xlane.f32.xlu1 %v1205_v40  ;;  %v1159_v60 = vmul.f32 %v2681_v33, %v2681_v33  ;;  %v830_v47 = vsel %vm812_vm1, %v828_v23, %v829_v24  ;;  %v943_v29 = vsel %vm925_vm2, %v941_v31, %v942_v30  ;;  %v1056_v50 = vsel %vm1038_vm3, %v1054_v36, %v1055_v34  ;;  %v2696_v61 = vpop.f32.mrb[38].mxu0 }
 0x14d   :  { %v655_v52 = vadd.f32 %v2636_v14, %v430_v38  ;;  %v1017_v53 = vmax.f32 %v904_v42, %v942_v30  ;;  %v903_v7 = vmax.f32 %v758_v62, %v830_v47  ;;  %v831_v63 = vrot.slane %v760_v37, 1  ;;  %v686_v2 = vpop.f32.mrb[39].mxu0 }
 0x14e   :  { %1203 = vadd.xlane.f32.xlu0 %v1159_v60  ;;  %v434_v54 = vpop.f32.mrb[28].mxu1  ;;  %v944_v6 = vrot.slane %v760_v37, 2  ;;  %v1057_v12 = vrot.slane %v760_v37, 3 }
 0x14f   :  { %v761_v55 = vmax.f32 %v655_v52, 0.0  ;;  %v435_v56 = vadd.f32 %v2577_v25, %v434_v54  ;;  %v436_v58 = vpop.f32.mrb[29].mxu1  ;;  %v2694_v35 = vmax.f32 %v1017_v53, %v1055_v34  ;;  %v1016_v1 = vmax.f32 %v903_v7, %v943_v29 }
 0x150   :  { %v2705_v20 = vpop.f32.mrb[40].mxu0 }
 0x151   :  { %v832_v3 = vrot.slane %v761_v55, 1  ;;  %v660_v27 = vadd.f32 %v2647_v32, %v435_v56  ;;  %v1162_v14 = vmul.f32 %v2694_v35, %v2694_v35  ;;  %v945_v5 = vrot.slane %v761_v55, 2  ;;  %v691_v24 = vpop.f32.mrb[41].mxu0 }
 0x152   :  { %v439_v62 = vpop.f32.mrb[30].mxu1  ;;  %v2701_v8 = vmax.f32 %v1016_v1, %v1056_v50  ;;  %v1058_v9 = vrot.slane %v761_v55, 3 }
 0x153   :  { %v762_v15 = vmax.f32 %v660_v27, 0.0  ;;  %v440_v17 = vadd.f32 %v2577_v25, %v439_v62  ;;  %v441_v18 = vpop.f32.mrb[31].mxu1  ;;  %v1210_v43 = vsel %vm1038_vm3, %v1162_v14, 0.0  ;;  %v906_v19 = vmax.f32 %v761_v55, %v832_v3 }
 0x154   :  { %1211 = vadd.xlane.f32.xlu1 %v1210_v43  ;;  %v1161_v32 = vmul.f32 %v2701_v8, %v2701_v8  ;;  %v833_v23 = vsel %vm812_vm1, %v831_v63, %v832_v3  ;;  %v946_v26 = vsel %vm925_vm2, %v944_v6, %v945_v5  ;;  %v1059_v28 = vsel %vm1038_vm3, %v1057_v12, %v1058_v9  ;;  %v2716_v39 = vpop.f32.mrb[42].mxu0 }
 0x155   :  { %v665_v0 = vadd.f32 %v2656_v49, %v440_v17  ;;  %v1019_v41 = vmax.f32 %v906_v19, %v945_v5  ;;  %v905_v31 = vmax.f32 %v760_v37, %v833_v23  ;;  %v834_v40 = vrot.slane %v762_v15, 1  ;;  %v696_v60 = vpop.f32.mrb[43].mxu0 }
 0x156   :  { %1208 = vadd.xlane.f32.xlu0 %v1161_v32  ;;  %v444_v30 = vpop.f32.mrb[32].mxu1  ;;  %v947_v51 = vrot.slane %v762_v15, 2  ;;  %v1060_v54 = vrot.slane %v762_v15, 3 }
 0x157   :  { %v763_v57 = vmax.f32 %v665_v0, 0.0  ;;  %v445_v34 = vadd.f32 %v2577_v25, %v444_v30  ;;  %v446_v36 = vpop.f32.mrb[33].mxu1  ;;  %v2714_v38 = vmax.f32 %v1019_v41, %v1058_v9  ;;  %v1018_v42 = vmax.f32 %v905_v31, %v946_v26 }
 0x158   :  { %v2725_v1 = vpop.f32.mrb[44].mxu0 }
 0x159   :  { %v835_v47 = vrot.slane %v763_v57, 1  ;;  %v670_v29 = vadd.f32 %v2665_v4, %v445_v34  ;;  %v1164_v49 = vmul.f32 %v2714_v38, %v2714_v38  ;;  %v948_v50 = vrot.slane %v763_v57, 2  ;;  %v701_v14 = vpop.f32.mrb[45].mxu0 }
 0x15a   :  { %v449_v37 = vpop.f32.mrb[34].mxu1  ;;  %v2721_v52 = vmax.f32 %v1018_v42, %v1059_v28  ;;  %v1061_v53 = vrot.slane %v763_v57, 3 }
 0x15b   :  { %v764_v7 = vmax.f32 %v670_v29, 0.0  ;;  %v450_v55 = vadd.f32 %v2577_v25, %v449_v37  ;;  %v451_v56 = vpop.f32.mrb[35].mxu1  ;;  %v1215_v58 = vsel %vm1038_vm3, %v1164_v49, 0.0  ;;  %v908_v63 = vmax.f32 %v763_v57, %v835_v47 }
 0x15c   :  { %1216 = vadd.xlane.f32.xlu1 %v1215_v58  ;;  %v1163_v4 = vmul.f32 %v2721_v52, %v2721_v52  ;;  %v836_v2 = vsel %vm812_vm1, %v834_v40, %v835_v47  ;;  %v949_v3 = vsel %vm925_vm2, %v947_v51, %v948_v50  ;;  %v1062_v27 = vsel %vm1038_vm3, %v1060_v54, %v1061_v53  ;;  %v2736_v19 = vpop.f32.mrb[46].mxu0 }
 0x15d   :  { %v675_v5 = vadd.f32 %v2676_v22, %v450_v55  ;;  %v1021_v6 = vmax.f32 %v908_v63, %v948_v50  ;;  %v907_v9 = vmax.f32 %v762_v15, %v836_v2  ;;  %v837_v32 = vrot.slane %v764_v7, 1  ;;  %v706_v26 = vpop.f32.mrb[47].mxu0 }
 0x15e   :  { %1213 = vadd.xlane.f32.xlu0 %v1163_v4  ;;  %v454_v62 = vpop.f32.mrb[36].mxu1  ;;  %v950_v41 = vrot.slane %v764_v7, 2  ;;  %v1063_v57 = vrot.slane %v764_v7, 3 }
 0x15f   :  { %v765_v12 = vmax.f32 %v675_v5, 0.0  ;;  %v455_v17 = vadd.f32 %v2577_v25, %v454_v62  ;;  %v456_v18 = vpop.f32.mrb[37].mxu1  ;;  %v2734_v43 = vmax.f32 %v1021_v6, %v1061_v53  ;;  %v1020_v23 = vmax.f32 %v907_v9, %v949_v3 }
 0x160   :  { %v2745_v47 = vpop.f32.mrb[48].mxu0 }
 0x161   :  { %v838_v28 = vrot.slane %v765_v12, 1  ;;  %v680_v24 = vadd.f32 %v2685_v46, %v455_v17  ;;  %v1166_v22 = vmul.f32 %v2734_v43, %v2734_v43  ;;  %v951_v0 = vrot.slane %v765_v12, 2  ;;  %v711_v51 = vpop.f32.mrb[49].mxu0 }
 0x162   :  { %v459_v15 = vpop.f32.mrb[38].mxu1  ;;  %v2741_v30 = vmax.f32 %v1020_v23, %v1062_v27  ;;  %v1064_v31 = vrot.slane %v765_v12, 3 }
 0x163   :  { %v766_v34 = vmax.f32 %v680_v24, 0.0  ;;  %v460_v36 = vadd.f32 %v2577_v25, %v459_v15  ;;  %v461_v40 = vpop.f32.mrb[39].mxu1  ;;  %v1220_v42 = vsel %vm1038_vm3, %v1166_v22, 0.0  ;;  %v910_v60 = vmax.f32 %v765_v12, %v838_v28 }
 0x164   :  { %1221 = vadd.xlane.f32.xlu1 %v1220_v42  ;;  %v1165_v46 = vmul.f32 %v2741_v30, %v2741_v30  ;;  %v839_v29 = vsel %vm812_vm1, %v837_v32, %v838_v28  ;;  %v952_v49 = vsel %vm925_vm2, %v950_v41, %v951_v0  ;;  %v1065_v50 = vsel %vm1038_vm3, %v1063_v57, %v1064_v31  ;;  %v2756_v2 = vpop.f32.mrb[50].mxu0 }
 0x165   :  { %v685_v37 = vadd.f32 %v2696_v61, %v460_v36  ;;  %v1023_v53 = vmax.f32 %v910_v60, %v951_v0  ;;  %v909_v55 = vmax.f32 %v764_v7, %v839_v29  ;;  %v840_v3 = vrot.slane %v766_v34, 1  ;;  %v716_v14 = vpop.f32.mrb[51].mxu0 }
 0x166   :  { %1218 = vadd.xlane.f32.xlu0 %v1165_v46  ;;  %v464_v54 = vpop.f32.mrb[40].mxu1  ;;  %v953_v9 = vrot.slane %v766_v34, 2  ;;  %v1066_v18 = vrot.slane %v766_v34, 3 }
 0x167   :  { %v767_v56 = vmax.f32 %v685_v37, 0.0  ;;  %v465_v58 = vadd.f32 %v2577_v25, %v464_v54  ;;  %v466_v63 = vpop.f32.mrb[41].mxu1  ;;  %v2754_v4 = vmax.f32 %v1023_v53, %v1064_v31  ;;  %v1022_v27 = vmax.f32 %v909_v55, %v952_v49 }
 0x168   :  { %v2765_v22 = vpop.f32.mrb[52].mxu0 }
 0x169   :  { %v841_v5 = vrot.slane %v767_v56, 1  ;;  %v690_v6 = vadd.f32 %v2705_v20, %v465_v58  ;;  %v1168_v61 = vmul.f32 %v2754_v4, %v2754_v4  ;;  %v954_v62 = vrot.slane %v767_v56, 2  ;;  %v721_v31 = vpop.f32.mrb[53].mxu0 }
 0x16a   :  { %v469_v7 = vpop.f32.mrb[42].mxu1  ;;  %v2761_v12 = vmax.f32 %v1022_v27, %v1065_v50  ;;  %v1067_v17 = vrot.slane %v767_v56, 3 }
 0x16b   :  { %v768_v32 = vmax.f32 %v690_v6, 0.0  ;;  %v470_v23 = vadd.f32 %v2577_v25, %v469_v7  ;;  %v471_v26 = vpop.f32.mrb[43].mxu1  ;;  %v1225_v28 = vsel %vm1038_vm3, %v1168_v61, 0.0  ;;  %v912_v24 = vmax.f32 %v767_v56, %v841_v5 }
 0x16c   :  { %1226 = vadd.xlane.f32.xlu1 %v1225_v28  ;;  %v1167_v20 = vmul.f32 %v2761_v12, %v2761_v12  ;;  %v842_v0 = vsel %vm812_vm1, %v840_v3, %v841_v5  ;;  %v955_v41 = vsel %vm925_vm2, %v953_v9, %v954_v62  ;;  %v1068_v15 = vsel %vm1038_vm3, %v1066_v18, %v1067_v17  ;;  %v2776_v50 = vpop.f32.mrb[54].mxu0 }
 0x16d   :  { %v695_v57 = vadd.f32 %v2716_v39, %v470_v23  ;;  %v1025_v36 = vmax.f32 %v912_v24, %v954_v62  ;;  %v911_v42 = vmax.f32 %v766_v34, %v842_v0  ;;  %v843_v51 = vrot.slane %v768_v32, 1  ;;  %v726_v53 = vpop.f32.mrb[55].mxu0 }
 0x16e   :  { %1223 = vadd.xlane.f32.xlu0 %v1167_v20  ;;  %v474_v40 = vpop.f32.mrb[44].mxu1  ;;  %v956_v58 = vrot.slane %v768_v32, 2  ;;  %v1069_v27 = vrot.slane %v768_v32, 3 }
 0x16f   :  { %v769_v60 = vmax.f32 %v695_v57, 0.0  ;;  %v475_v46 = vadd.f32 %v2577_v25, %v474_v40  ;;  %v476_v29 = vpop.f32.mrb[45].mxu1  ;;  %v2774_v49 = vmax.f32 %v1025_v36, %v1067_v17  ;;  %v1024_v37 = vmax.f32 %v911_v42, %v955_v41 }
 0x170   :  { %v2785_v9 = vpop.f32.mrb[56].mxu0 }
 0x171   :  { %v844_v54 = vrot.slane %v769_v60, 1  ;;  %v700_v55 = vadd.f32 %v2725_v1, %v475_v46  ;;  %v1170_v39 = vmul.f32 %v2774_v49, %v2774_v49  ;;  %v957_v56 = vrot.slane %v769_v60, 2  ;;  %v731_v23 = vpop.f32.mrb[57].mxu0 }
 0x172   :  { %v479_v34 = vpop.f32.mrb[46].mxu1  ;;  %v2781_v63 = vmax.f32 %v1024_v37, %v1068_v15  ;;  %v1070_v3 = vrot.slane %v769_v60, 3 }
 0x173   :  { %v770_v14 = vmax.f32 %v700_v55, 0.0  ;;  %v480_v5 = vadd.f32 %v2577_v25, %v479_v34  ;;  %v481_v6 = vpop.f32.mrb[47].mxu1  ;;  %v1230_v61 = vsel %vm1038_vm3, %v1170_v39, 0.0  ;;  %v914_v62 = vmax.f32 %v769_v60, %v844_v54 }
 0x174   :  { %1231 = vadd.xlane.f32.xlu1 %v1230_v61  ;;  %v1169_v1 = vmul.f32 %v2781_v63, %v2781_v63  ;;  %v845_v7 = vsel %vm812_vm1, %v843_v51, %v844_v54  ;;  %v958_v17 = vsel %vm925_vm2, %v956_v58, %v957_v56  ;;  %v1071_v18 = vsel %vm1038_vm3, %v1069_v27, %v1070_v3  ;;  %v2796_v57 = vpop.f32.mrb[58].mxu0 }
 0x175   :  { %v705_v26 = vadd.f32 %v2736_v19, %v480_v5  ;;  %v1027_v28 = vmax.f32 %v914_v62, %v957_v56  ;;  %v913_v20 = vmax.f32 %v768_v32, %v845_v7  ;;  %v846_v36 = vrot.slane %v770_v14, 1  ;;  %v736_v42 = vpop.f32.mrb[59].mxu0 }
 0x176   :  { %1228 = vadd.xlane.f32.xlu0 %v1169_v1  ;;  %v484_v24 = vpop.f32.mrb[48].mxu1  ;;  %v959_v51 = vrot.slane %v770_v14, 2  ;;  %v1072_v54 = vrot.slane %v770_v14, 3 }
 0x177   :  { %v771_v0 = vmax.f32 %v705_v26, 0.0  ;;  %v485_v41 = vadd.f32 %v2577_v25, %v484_v24  ;;  %v486_v15 = vpop.f32.mrb[49].mxu1  ;;  %v2794_v31 = vmax.f32 %v1027_v28, %v1070_v3  ;;  %v1026_v40 = vmax.f32 %v913_v20, %v958_v17 }
 0x178   :  { %v2805_v3 = vpop.f32.mrb[60].mxu0 }
 0x179   :  { %v847_v60 = vrot.slane %v771_v0, 1  ;;  %v710_v46 = vadd.f32 %v2745_v47, %v485_v41  ;;  %v1172_v19 = vmul.f32 %v2794_v31, %v2794_v31  ;;  %v960_v29 = vrot.slane %v771_v0, 2  ;;  %v741_v61 = vpop.f32.mrb[61].mxu0 }
 0x17a   :  { %v489_v32 = vpop.f32.mrb[50].mxu1  ;;  %v2801_v37 = vmax.f32 %v1026_v40, %v1071_v18  ;;  %v1073_v53 = vrot.slane %v771_v0, 3 }
 0x17b   :  { %v772_v55 = vmax.f32 %v710_v46, 0.0  ;;  %v490_v39 = vadd.f32 %v2577_v25, %v489_v32  ;;  %v491_v56 = vpop.f32.mrb[51].mxu1  ;;  %v1235_v58 = vsel %vm1038_vm3, %v1172_v19, 0.0  ;;  %v916_v34 = vmax.f32 %v771_v0, %v847_v60 }
 0x17c   :  { %1236 = vadd.xlane.f32.xlu1 %v1235_v58  ;;  %v1171_v47 = vmul.f32 %v2801_v37, %v2801_v37  ;;  %v848_v27 = vsel %vm812_vm1, %v846_v36, %v847_v60  ;;  %v961_v5 = vsel %vm925_vm2, %v959_v51, %v960_v29  ;;  %v1074_v6 = vsel %vm1038_vm3, %v1072_v54, %v1073_v53  ;;  %v2816_v24 = vpop.f32.mrb[62].mxu0 }
 0x17d   :  { %v715_v62 = vadd.f32 %v2756_v2, %v490_v39  ;;  %v1029_v1 = vmax.f32 %v916_v34, %v960_v29  ;;  %v915_v17 = vmax.f32 %v770_v14, %v848_v27  ;;  %v849_v20 = vrot.slane %v772_v55, 1  ;;  %v746_v41 = vpop.f32.mrb[63].mxu0 }
 0x17e   :  { %1233 = vadd.xlane.f32.xlu0 %v1171_v47  ;;  %v494_v7 = vpop.f32.mrb[52].mxu1  ;;  %v962_v42 = vrot.slane %v772_v55, 2  ;;  %v1075_v19 = vrot.slane %v772_v55, 3 }
 0x17f   :  { %v773_v18 = vmax.f32 %v715_v62, 0.0  ;;  %v495_v23 = vadd.f32 %v2577_v25, %v494_v7  ;;  %v496_v26 = vpop.f32.mrb[53].mxu1  ;;  %v2814_v28 = vmax.f32 %v1029_v1, %v1073_v53  ;;  %v1028_v0 = vmax.f32 %v915_v17, %v961_v5 }
 0x181   :  { %v850_v15 = vrot.slane %v773_v18, 1  ;;  %v720_v36 = vadd.f32 %v2765_v22, %v495_v23  ;;  %v1174_v2 = vmul.f32 %v2814_v28, %v2814_v28  ;;  %v963_v40 = vrot.slane %v773_v18, 2 }
 0x182   :  { %v499_v14 = vpop.f32.mrb[54].mxu1  ;;  %v2821_v60 = vmax.f32 %v1028_v0, %v1074_v6  ;;  %v1076_v46 = vrot.slane %v773_v18, 3 }
 0x183   :  { %v774_v29 = vmax.f32 %v720_v36, 0.0  ;;  %v500_v51 = vadd.f32 %v2577_v25, %v499_v14  ;;  %v501_v32 = vpop.f32.mrb[55].mxu1  ;;  %v1240_v53 = vsel %vm1038_vm3, %v1174_v2, 0.0  ;;  %v918_v54 = vmax.f32 %v773_v18, %v850_v15 }
 0x184   :  { %1241 = vadd.xlane.f32.xlu1 %v1240_v53  ;;  %v1173_v22 = vmul.f32 %v2821_v60, %v2821_v60  ;;  %v851_v39 = vsel %vm812_vm1, %v849_v20, %v850_v15  ;;  %v964_v56 = vsel %vm925_vm2, %v962_v42, %v963_v40  ;;  %v1077_v58 = vsel %vm1038_vm3, %v1075_v19, %v1076_v46 }
 0x185   :  { %v725_v34 = vadd.f32 %v2776_v50, %v500_v51  ;;  %v1031_v47 = vmax.f32 %v918_v54, %v963_v40  ;;  %v917_v5 = vmax.f32 %v772_v55, %v851_v39  ;;  %v852_v7 = vrot.slane %v774_v29, 1 }
 0x186   :  { %1238 = vadd.xlane.f32.xlu0 %v1173_v22  ;;  %v504_v27 = vpop.f32.mrb[56].mxu1  ;;  %v965_v50 = vrot.slane %v774_v29, 2  ;;  %v1078_v15 = vrot.slane %v774_v29, 3 }
 0x187   :  { %v775_v6 = vmax.f32 %v725_v34, 0.0  ;;  %v505_v61 = vadd.f32 %v2577_v25, %v504_v27  ;;  %v506_v62 = vpop.f32.mrb[57].mxu1  ;;  %v2832_v1 = vmax.f32 %v1031_v47, %v1076_v46  ;;  %v1030_v17 = vmax.f32 %v917_v5, %v964_v56 }
 0x189   :  { %v853_v18 = vrot.slane %v775_v6, 1  ;;  %v730_v23 = vadd.f32 %v2785_v9, %v505_v61  ;;  %v1176_v26 = vmul.f32 %v2832_v1, %v2832_v1  ;;  %v966_v20 = vrot.slane %v775_v6, 2 }
 0x18a   :  { %v509_v0 = vpop.f32.mrb[58].mxu1  ;;  %v2837_v41 = vmax.f32 %v1030_v17, %v1077_v58  ;;  %v1079_v55 = vrot.slane %v775_v6, 3 }
 0x18b   :  { %v776_v36 = vmax.f32 %v730_v23, 0.0  ;;  %v510_v2 = vadd.f32 %v2577_v25, %v509_v0  ;;  %v511_v40 = vpop.f32.mrb[59].mxu1  ;;  %v1245_v42 = vsel %vm1038_vm3, %v1176_v26, 0.0  ;;  %v920_v14 = vmax.f32 %v775_v6, %v853_v18 }
 0x18c   :  { %1246 = vadd.xlane.f32.xlu1 %v1245_v42  ;;  %v1175_v9 = vmul.f32 %v2837_v41, %v2837_v41  ;;  %v854_v46 = vsel %vm812_vm1, %v852_v7, %v853_v18  ;;  %v967_v19 = vsel %vm925_vm2, %v965_v50, %v966_v20  ;;  %v1080_v51 = vsel %vm1038_vm3, %v1078_v15, %v1079_v55 }
 0x18d   :  { %v735_v32 = vadd.f32 %v2796_v57, %v510_v2  ;;  %v1033_v53 = vmax.f32 %v920_v14, %v966_v20  ;;  %v919_v22 = vmax.f32 %v774_v29, %v854_v46  ;;  %v855_v47 = vrot.slane %v776_v36, 1 }
 0x18e   :  { %1243 = vadd.xlane.f32.xlu0 %v1175_v9  ;;  %v514_v54 = vpop.f32.mrb[60].mxu1  ;;  %v968_v57 = vrot.slane %v776_v36, 2  ;;  %v1081_v18 = vrot.slane %v776_v36, 3 }
 0x18f   :  { %v777_v39 = vmax.f32 %v735_v32, 0.0  ;;  %v515_v56 = vadd.f32 %v2577_v25, %v514_v54  ;;  %v516_v58 = vpop.f32.mrb[61].mxu1  ;;  %v2848_v34 = vmax.f32 %v1033_v53, %v1079_v55  ;;  %v1032_v27 = vmax.f32 %v919_v22, %v967_v19 }
 0x191   :  { %v856_v5 = vrot.slane %v777_v39, 1  ;;  %v740_v6 = vadd.f32 %v2805_v3, %v515_v56  ;;  %v1178_v61 = vmul.f32 %v2848_v34, %v2848_v34  ;;  %v969_v62 = vrot.slane %v777_v39, 2 }
 0x192   :  { %v519_v7 = vpop.f32.mrb[62].mxu1  ;;  %v2853_v17 = vmax.f32 %v1032_v27, %v1080_v51  ;;  %v1082_v29 = vrot.slane %v777_v39, 3 }
 0x193   :  { %v778_v23 = vmax.f32 %v740_v6, 0.0  ;;  %v520_v26 = vadd.f32 %v2577_v25, %v519_v7  ;;  %v521_v20 = vpop.f32.mrb[63].mxu1  ;;  %v1250_v50 = vsel %vm1038_vm3, %v1178_v61, 0.0  ;;  %v922_v0 = vmax.f32 %v777_v39, %v856_v5 }
 0x194   :  { %1251 = vadd.xlane.f32.xlu1 %v1250_v50  ;;  %v1177_v3 = vmul.f32 %v2853_v17, %v2853_v17  ;;  %v857_v55 = vsel %vm812_vm1, %v855_v47, %v856_v5  ;;  %v970_v15 = vsel %vm925_vm2, %v968_v57, %v969_v62  ;;  %v1083_v2 = vsel %vm1038_vm3, %v1081_v18, %v1082_v29 }
 0x195   :  { %v745_v40 = vadd.f32 %v2816_v24, %v520_v26  ;;  %v1035_v42 = vmax.f32 %v922_v0, %v969_v62  ;;  %v921_v14 = vmax.f32 %v776_v36, %v857_v55  ;;  %v858_v46 = vrot.slane %v778_v23, 1 }
 0x196   :  { %1248 = vadd.xlane.f32.xlu0 %v1177_v3  ;;  %v971_v19 = vrot.slane %v778_v23, 2  ;;  %v1084_v56 = vrot.slane %v778_v23, 3 }
 0x197   :  { %v779_v25 = vmax.f32 %v745_v40, 0.0  ;;  %v2863_v9 = vmax.f32 %v1035_v42, %v1082_v29  ;;  %v1034_v51 = vmax.f32 %v921_v14, %v970_v15 }
 0x199   :  { %v859_v32 = vrot.slane %v779_v25, 1  ;;  %v1180_v53 = vmul.f32 %v2863_v9, %v2863_v9  ;;  %v972_v54 = vrot.slane %v779_v25, 2  ;;  %v1085_v22 = vrot.slane %v779_v25, 3 }
 0x19a   :  { %v2867_v39 = vmax.f32 %v1034_v51, %v1083_v2 }
 0x19b   :  { %v1255_v24 = vsel %vm1038_vm3, %v1180_v53, 0.0  ;;  %v924_v58 = vmax.f32 %v779_v25, %v859_v32  ;;  %v860_v36 = vsel %vm812_vm1, %v858_v46, %v859_v32  ;;  %v973_v47 = vsel %vm925_vm2, %v971_v19, %v972_v54 }
 0x19c   :  { %1256 = vadd.xlane.f32.xlu1 %v1255_v24  ;;  %v1179_v27 = vmul.f32 %v2867_v39, %v2867_v39  ;;  %v923_v5 = vmax.f32 %v778_v23, %v860_v36  ;;  %v1086_v6 = vsel %vm1038_vm3, %v1084_v56, %v1085_v22 }
 0x19d   :  { %v1037_v61 = vmax.f32 %v924_v58, %v972_v54 }
 0x19e   :  { %1253 = vadd.xlane.f32.xlu0 %v1179_v27  ;;  %v1036_v62 = vmax.f32 %v923_v5, %v973_v47 }
 0x19f   :  { %v2875_v57 = vmax.f32 %v1037_v61, %v1085_v22 }
 0x1a0   :  { %v2877_v7 = vmax.f32 %v1036_v62, %v1086_v6 }
 0x1a1   :  { %v1182_v29 = vmul.f32 %v2875_v57, %v2875_v57 }
 0x1a2   :  { %v1181_v18 = vmul.f32 %v2877_v7, %v2877_v7 }
 0x1a3   :  { %v1260_v26 = vsel %vm1038_vm3, %v1182_v29, 0.0 }
 0x1a4   :  { %1261 = vadd.xlane.f32.xlu1 %v1260_v26  ;;  %1258 = vadd.xlane.f32.xlu0 %v1181_v18 }
 0x1b9   :  { %v1184_v23 = vpop.xlane.xlu0 %1183 }
 0x1ba   :  { %1827 = vrsqrt.f32 %v1184_v23  ;;  %vm1265_vm4 = vcmp.eq.f32.partialorder %v1184_v23, inf  ;;  %v1268_v15 = vand.u32 2147483648, %v1184_v23  ;;  %vm1267_vm5 = vcmp.eq.f32.partialorder %v1184_v23, 0.0 }
 0x1bd   :  { %v1187_v20 = vpop.xlane.xlu0 %1186 }
 0x1be   :  { %1829 = vrsqrt.f32 %v1187_v20  ;;  %vm1272_vm6 = vcmp.eq.f32.partialorder %v1187_v20, inf  ;;  %v1275_v51 = vand.u32 2147483648, %v1187_v20  ;;  %vm1274_vm7 = vcmp.eq.f32.partialorder %v1187_v20, 0.0 }
 0x1c1   :  { %v1189_v50 = vpop.xlane.xlu1 %1188 }
 0x1c2   :  { %1831 = vrsqrt.f32 %v1189_v50  ;;  %vm1279_vm8 = vcmp.eq.f32.partialorder %v1189_v50, inf  ;;  %v1282_v24 = vand.u32 2147483648, %v1189_v50  ;;  %vm1281_vm9 = vcmp.eq.f32.partialorder %v1189_v50, 0.0 }
 0x1c4   :  { %v1828_v0 = vpop.eup %1827 }
 0x1c5   :  { %v1264_v3 = vmul.f32 %v1828_v0, %v1184_v23  ;;  %v1192_v55 = vpop.xlane.xlu1 %1191 }
 0x1c6   :  { %1833 = vrsqrt.f32 %v1192_v55  ;;  %vm1286_vm10 = vcmp.eq.f32.partialorder %v1192_v55, inf  ;;  %v1289_v61 = vand.u32 2147483648, %v1192_v55  ;;  %vm1288_vm11 = vcmp.eq.f32.partialorder %v1192_v55, 0.0 }
 0x1c7   :  { %v1266_v2 = vsel %vm1265_vm4, %v1184_v23, %v1264_v3 }
 0x1c8   :  { %v1830_v40 = vpop.eup %1829  ;;  %v1269_v42 = vsel %vm1267_vm5, %v1268_v15, %v1266_v2 }
 0x1c9   :  { %v1487_v14 = vmax.f32 %v1269_v42, 1e-12  ;;  %v1271_v25 = vmul.f32 %v1830_v40, %v1187_v20  ;;  %v1197_v46 = vpop.xlane.xlu1 %1196  ;;  %v1194_v19 = vpop.xlane.xlu0 %1193 }
 0x1ca   :  { %1835 = vrsqrt.f32 %v1197_v46  ;;  %vm1300_vm12 = vcmp.eq.f32.partialorder %v1197_v46, inf  ;;  %v1303_v15 = vand.u32 2147483648, %v1197_v46  ;;  %vm1302_vm13 = vcmp.eq.f32.partialorder %v1197_v46, 0.0 }
 0x1cb   :  { %1837 = vrcp.f32 %v1487_v14  ;;  %v1273_v32 = vsel %vm1272_vm6, %v1187_v20, %v1271_v25  ;;  %vm1293_vm14 = vcmp.eq.f32.partialorder %v1194_v19, inf  ;;  %v1296_v42 = vand.u32 2147483648, %v1194_v19 }
 0x1cc   :  { %v1832_v53 = vpop.eup %1831  ;;  %v1276_v54 = vsel %vm1274_vm7, %v1275_v51, %v1273_v32  ;;  %1839 = vrsqrt.f32 %v1194_v19  ;;  %vm1295_vm15 = vcmp.eq.f32.partialorder %v1194_v19, 0.0 }
 0x1cd   :  { %v1488_v22 = vmax.f32 %v1276_v54, 1e-12  ;;  %v1278_v56 = vmul.f32 %v1832_v53, %v1189_v50 }
 0x1cf   :  { %1841 = vrcp.f32 %v1488_v22  ;;  %v1280_v58 = vsel %vm1279_vm8, %v1189_v50, %v1278_v56 }
 0x1d0   :  { %v1834_v36 = vpop.eup %1833  ;;  %v1283_v47 = vsel %vm1281_vm9, %v1282_v24, %v1280_v58 }
 0x1d1   :  { %v1489_v27 = vmax.f32 %v1283_v47, 1e-12  ;;  %v1285_v5 = vmul.f32 %v1834_v36, %v1192_v55  ;;  %v1202_v6 = vpop.xlane.xlu1 %1201 }
 0x1d2   :  { %1843 = vrsqrt.f32 %v1202_v6  ;;  %vm1314_vm0 = vcmp.eq.f32.partialorder %v1202_v6, inf  ;;  %v1317_v36 = vand.u32 2147483648, %v1202_v6  ;;  %vm1316_vm1 = vcmp.eq.f32.partialorder %v1202_v6, 0.0 }
 0x1d3   :  { %1845 = vrcp.f32 %v1489_v27  ;;  %v1287_v62 = vsel %vm1286_vm10, %v1192_v55, %v1285_v5  ;;  %v1199_v29 = vpop.xlane.xlu0 %1198 }
 0x1d4   :  { %v1836_v18 = vpop.eup %1835  ;;  %v1290_v26 = vsel %vm1288_vm11, %v1289_v61, %v1287_v62  ;;  %1847 = vrsqrt.f32 %v1199_v29  ;;  %vm1307_vm2 = vcmp.eq.f32.partialorder %v1199_v29, inf  ;;  %v1310_v5 = vand.u32 2147483648, %v1199_v29 }
 0x1d5   :  { %v1838_v23 = vpop.eup %1837  ;;  %v1490_v20 = vmax.f32 %v1290_v26, 1e-12  ;;  %v1299_v0 = vmul.f32 %v1836_v18, %v1197_v46  ;;  %vm1309_vm3 = vcmp.eq.f32.partialorder %v1199_v29, 0.0 }
 0x1d6   :  { %v1840_v3 = vpop.eup %1839  ;;  %v1583_v50 = vmul.f32 %v1838_v23, %v2597_v10 }
 0x1d7   :  { %1849 = vrcp.f32 %v1490_v20  ;;  %v1301_v2 = vsel %vm1300_vm12, %v1197_v46, %v1299_v0  ;;  %v1292_v40 = vmul.f32 %v1840_v3, %v1194_v19 }
 0x1d8   :  { %1615 = vst [vmem:[%s3015_s3] sm:$0xff] %v1583_v50  ;;  %v1304_v55 = vsel %vm1302_vm13, %v1303_v15, %v1301_v2 }
 0x1d9   :  { %v1842_v14 = vpop.eup %1841  ;;  %v1492_v25 = vmax.f32 %v1304_v55, 1e-12  ;;  %v1294_v51 = vsel %vm1293_vm14, %v1194_v19, %v1292_v40  ;;  %v1207_v32 = vpop.xlane.xlu1 %1206 }
 0x1da   :  { %v1584_v10 = vmul.f32 %v1842_v14, %v2599_v11  ;;  %v1297_v53 = vsel %vm1295_vm15, %v1296_v42, %v1294_v51  ;;  %1851 = vrsqrt.f32 %v1207_v32  ;;  %vm1328_vm4 = vcmp.eq.f32.partialorder %v1207_v32, inf }
 0x1db   :  { %1853 = vrcp.f32 %v1492_v25  ;;  %v1491_v54 = vmax.f32 %v1297_v53, 1e-12  ;;  %v1204_v46 = vpop.xlane.xlu0 %1203  ;;  %v1331_v2 = vand.u32 2147483648, %v1207_v32  ;;  %vm1330_vm5 = vcmp.eq.f32.partialorder %v1207_v32, 0.0 }
 0x1dc   :  { %v1844_v22 = vpop.eup %1843  ;;  %1616 = vst [vmem:[%s3015_s3 + $0x8] sm:$0x1f] %v1584_v10  ;;  %1855 = vrsqrt.f32 %v1204_v46  ;;  %vm1321_vm6 = vcmp.eq.f32.partialorder %v1204_v46, inf  ;;  %v1324_v25 = vand.u32 2147483648, %v1204_v46  ;;  %vm1323_vm7 = vcmp.eq.f32.partialorder %v1204_v46, 0.0 }
 0x1dd   :  { %v1846_v56 = vpop.eup %1845  ;;  %1857 = vrcp.f32 %v1491_v54  ;;  %v1313_v24 = vmul.f32 %v1844_v22, %v1202_v6 }
 0x1de   :  { %v1848_v58 = vpop.eup %1847  ;;  %v1585_v19 = vmul.f32 %v1846_v56, %v2616_v44 }
 0x1df   :  { %v1315_v11 = vsel %vm1314_vm0, %v1202_v6, %v1313_v24  ;;  %v1306_v47 = vmul.f32 %v1848_v58, %v1199_v29 }
 0x1e0   :  { %1617 = vst [vmem:[%s3015_s3 + $0x10] sm:$0xff] %v1585_v19  ;;  %v1318_v27 = vsel %vm1316_vm1, %v1317_v36, %v1315_v11 }
 0x1e1   :  { %v1850_v61 = vpop.eup %1849  ;;  %v1494_v62 = vmax.f32 %v1318_v27, 1e-12  ;;  %v1308_v18 = vsel %vm1307_vm2, %v1199_v29, %v1306_v47  ;;  %v1212_v26 = vpop.xlane.xlu1 %1211 }
 0x1e2   :  { %v1586_v23 = vmul.f32 %v1850_v61, %v2618_v45  ;;  %v1311_v44 = vsel %vm1309_vm3, %v1310_v5, %v1308_v18  ;;  %1859 = vrsqrt.f32 %v1212_v26  ;;  %vm1342_vm8 = vcmp.eq.f32.partialorder %v1212_v26, inf }
 0x1e3   :  { %1861 = vrcp.f32 %v1494_v62  ;;  %v1493_v20 = vmax.f32 %v1311_v44, 1e-12  ;;  %v1209_v6 = vpop.xlane.xlu0 %1208  ;;  %vm1344_vm9 = vcmp.eq.f32.partialorder %v1212_v26, 0.0 }
 0x1e4   :  { %v1852_v0 = vpop.eup %1851  ;;  %1618 = vst [vmem:[%s3015_s3 + $0x18] sm:$0x1f] %v1586_v23  ;;  %1863 = vrsqrt.f32 %v1209_v6  ;;  %vm1335_vm10 = vcmp.eq.f32.partialorder %v1209_v6, inf  ;;  %v1338_v5 = vand.u32 2147483648, %v1209_v6  ;;  %vm1337_vm11 = vcmp.eq.f32.partialorder %v1209_v6, 0.0 }
 0x1e5   :  { %v1854_v3 = vpop.eup %1853  ;;  %1865 = vrcp.f32 %v1493_v20  ;;  %v1327_v50 = vmul.f32 %v1852_v0, %v1207_v32 }
 0x1e6   :  { %v1856_v15 = vpop.eup %1855  ;;  %v1588_v29 = vmul.f32 %v1854_v3, %v2634_v13 }
 0x1e7   :  { %v1858_v45 = vpop.eup %1857  ;;  %v1329_v40 = vsel %vm1328_vm4, %v1207_v32, %v1327_v50  ;;  %v1320_v55 = vmul.f32 %v1856_v15, %v1204_v46 }
 0x1e8   :  { %1620 = vst [vmem:[%s3015_s3 + $0x28] sm:$0x1f] %v1588_v29  ;;  %v1587_v42 = vmul.f32 %v1858_v45, %v2638_v16  ;;  %v1332_v14 = vsel %vm1330_vm5, %v1331_v2, %v1329_v40 }
 0x1e9   :  { %v1496_v51 = vmax.f32 %v1332_v14, 1e-12  ;;  %v1322_v10 = vsel %vm1321_vm6, %v1204_v46, %v1320_v55  ;;  %v1217_v53 = vpop.xlane.xlu1 %1216  ;;  %v1345_v46 = vand.u32 2147483648, %v1212_v26 }
 0x1ea   :  { %1619 = vst [vmem:[%s3015_s3 + $0x20] sm:$0xff] %v1587_v42  ;;  %v1325_v13 = vsel %vm1323_vm7, %v1324_v25, %v1322_v10  ;;  %1867 = vrsqrt.f32 %v1217_v53  ;;  %vm1356_vm12 = vcmp.eq.f32.partialorder %v1217_v53, inf  ;;  %vm1358_vm13 = vcmp.eq.f32.partialorder %v1217_v53, 0.0 }
 0x1eb   :  { %1869 = vrcp.f32 %v1496_v51  ;;  %v1495_v32 = vmax.f32 %v1325_v13, 1e-12  ;;  %v1214_v54 = vpop.xlane.xlu0 %1213 }
 0x1ec   :  { %v1860_v22 = vpop.eup %1859  ;;  %1871 = vrsqrt.f32 %v1214_v54  ;;  %vm1349_vm14 = vcmp.eq.f32.partialorder %v1214_v54, inf  ;;  %v1352_v40 = vand.u32 2147483648, %v1214_v54  ;;  %vm1351_vm15 = vcmp.eq.f32.partialorder %v1214_v54, 0.0 }
 0x1ed   :  { %v1862_v56 = vpop.eup %1861  ;;  %1873 = vrcp.f32 %v1495_v32  ;;  %v1341_v16 = vmul.f32 %v1860_v22, %v1212_v26 }
 0x1ee   :  { %v1864_v24 = vpop.eup %1863  ;;  %v1590_v58 = vmul.f32 %v1862_v56, %v2654_v48 }
 0x1ef   :  { %v1866_v19 = vpop.eup %1865  ;;  %v1343_v36 = vsel %vm1342_vm8, %v1212_v26, %v1341_v16  ;;  %v1334_v11 = vmul.f32 %v1864_v24, %v1209_v6 }
 0x1f0   :  { %1622 = vst [vmem:[%s3015_s3 + $0x38] sm:$0x1f] %v1590_v58  ;;  %v1589_v47 = vmul.f32 %v1866_v19, %v2661_v59  ;;  %v1346_v27 = vsel %vm1344_vm9, %v1345_v46, %v1343_v36 }
 0x1f1   :  { %v1498_v61 = vmax.f32 %v1346_v27, 1e-12  ;;  %v1336_v62 = vsel %vm1335_vm10, %v1209_v6, %v1334_v11  ;;  %v1222_v18 = vpop.xlane.xlu1 %1221  ;;  %v1359_v6 = vand.u32 2147483648, %v1217_v53 }
 0x1f2   :  { %1621 = vst [vmem:[%s3015_s3 + $0x30] sm:$0xff] %v1589_v47  ;;  %v1339_v48 = vsel %vm1337_vm11, %v1338_v5, %v1336_v62  ;;  %1875 = vrsqrt.f32 %v1222_v18  ;;  %vm1370_vm0 = vcmp.eq.f32.partialorder %v1222_v18, inf  ;;  %vm1372_vm1 = vcmp.eq.f32.partialorder %v1222_v18, 0.0 }
 0x1f3   :  { %1877 = vrcp.f32 %v1498_v61  ;;  %v1497_v26 = vmax.f32 %v1339_v48, 1e-12  ;;  %v1219_v23 = vpop.xlane.xlu0 %1218 }
 0x1f4   :  { %v1868_v44 = vpop.eup %1867  ;;  %1879 = vrsqrt.f32 %v1219_v23  ;;  %vm1363_vm2 = vcmp.eq.f32.partialorder %v1219_v23, inf  ;;  %v1366_v46 = vand.u32 2147483648, %v1219_v23  ;;  %vm1365_vm3 = vcmp.eq.f32.partialorder %v1219_v23, 0.0 }
 0x1f5   :  { %v1870_v20 = vpop.eup %1869  ;;  %1881 = vrcp.f32 %v1497_v26  ;;  %v1355_v59 = vmul.f32 %v1868_v44, %v1217_v53 }
 0x1f6   :  { %v1872_v0 = vpop.eup %1871  ;;  %v1592_v3 = vmul.f32 %v1870_v20, %v2674_v21 }
 0x1f7   :  { %v1874_v50 = vpop.eup %1873  ;;  %v1357_v15 = vsel %vm1356_vm12, %v1217_v53, %v1355_v59  ;;  %v1348_v29 = vmul.f32 %v1872_v0, %v1214_v54 }
 0x1f8   :  { %1624 = vst [vmem:[%s3015_s3 + $0x48] sm:$0x1f] %v1592_v3  ;;  %v1591_v2 = vmul.f32 %v1874_v50, %v2681_v33  ;;  %v1360_v45 = vsel %vm1358_vm13, %v1359_v6, %v1357_v15 }
 0x1f9   :  { %v1500_v55 = vmax.f32 %v1360_v45, 1e-12  ;;  %v1350_v42 = vsel %vm1349_vm14, %v1214_v54, %v1348_v29  ;;  %v1227_v14 = vpop.xlane.xlu1 %1226  ;;  %v1373_v54 = vand.u32 2147483648, %v1222_v18 }
 0x1fa   :  { %1623 = vst [vmem:[%s3015_s3 + $0x40] sm:$0xff] %v1591_v2  ;;  %v1353_v21 = vsel %vm1351_vm15, %v1352_v40, %v1350_v42  ;;  %1883 = vrsqrt.f32 %v1227_v14  ;;  %vm1384_vm4 = vcmp.eq.f32.partialorder %v1227_v14, inf  ;;  %v1387_v48 = vand.u32 2147483648, %v1227_v14 }
 0x1fb   :  { %1885 = vrcp.f32 %v1500_v55  ;;  %v1499_v25 = vmax.f32 %v1353_v21, 1e-12  ;;  %v1224_v51 = vpop.xlane.xlu0 %1223  ;;  %vm1386_vm5 = vcmp.eq.f32.partialorder %v1227_v14, 0.0 }
 0x1fc   :  { %v1876_v10 = vpop.eup %1875  ;;  %1887 = vrsqrt.f32 %v1224_v51  ;;  %vm1377_vm6 = vcmp.eq.f32.partialorder %v1224_v51, inf  ;;  %v1380_v0 = vand.u32 2147483648, %v1224_v51  ;;  %vm1379_vm7 = vcmp.eq.f32.partialorder %v1224_v51, 0.0 }
 0x1fd   :  { %v1878_v53 = vpop.eup %1877  ;;  %1889 = vrcp.f32 %v1499_v25  ;;  %v1369_v33 = vmul.f32 %v1876_v10, %v1222_v18 }
 0x1fe   :  { %v1880_v13 = vpop.eup %1879  ;;  %v1594_v32 = vmul.f32 %v1878_v53, %v2694_v35 }
 0x1ff   :  { %v1882_v22 = vpop.eup %1881  ;;  %v1371_v56 = vsel %vm1370_vm0, %v1222_v18, %v1369_v33  ;;  %v1362_v16 = vmul.f32 %v1880_v13, %v1219_v23 }
 0x200   :  { %1626 = vst [vmem:[%s3015_s3 + $0x58] sm:$0x1f] %v1594_v32  ;;  %v1593_v24 = vmul.f32 %v1882_v22, %v2701_v8  ;;  %v1374_v58 = vsel %vm1372_vm1, %v1373_v54, %v1371_v56 }
 0x201   :  { %v1502_v19 = vmax.f32 %v1374_v58, 1e-12  ;;  %v1364_v36 = vsel %vm1363_vm2, %v1219_v23, %v1362_v16  ;;  %v1232_v11 = vpop.xlane.xlu1 %1231 }
 0x202   :  { %1625 = vst [vmem:[%s3015_s3 + $0x50] sm:$0xff] %v1593_v24  ;;  %v1367_v35 = vsel %vm1365_vm3, %v1366_v46, %v1364_v36  ;;  %1891 = vrsqrt.f32 %v1232_v11  ;;  %vm1398_vm8 = vcmp.eq.f32.partialorder %v1232_v11, inf  ;;  %v1401_v42 = vand.u32 2147483648, %v1232_v11 }
 0x203   :  { %1893 = vrcp.f32 %v1502_v19  ;;  %v1501_v47 = vmax.f32 %v1367_v35, 1e-12  ;;  %v1229_v27 = vpop.xlane.xlu0 %1228  ;;  %vm1400_vm9 = vcmp.eq.f32.partialorder %v1232_v11, 0.0 }
 0x204   :  { %v1884_v5 = vpop.eup %1883  ;;  %1895 = vrsqrt.f32 %v1229_v27  ;;  %vm1391_vm10 = vcmp.eq.f32.partialorder %v1229_v27, inf  ;;  %v1394_v53 = vand.u32 2147483648, %v1229_v27  ;;  %vm1393_vm11 = vcmp.eq.f32.partialorder %v1229_v27, 0.0 }
 0x205   :  { %v1886_v61 = vpop.eup %1885  ;;  %1897 = vrcp.f32 %v1501_v47  ;;  %v1383_v8 = vmul.f32 %v1884_v5, %v1227_v14 }
 0x206   :  { %v1888_v62 = vpop.eup %1887  ;;  %v1596_v18 = vmul.f32 %v1886_v61, %v2714_v38 }
 0x207   :  { %v1890_v26 = vpop.eup %1889  ;;  %v1385_v23 = vsel %vm1384_vm4, %v1227_v14, %v1383_v8  ;;  %v1376_v44 = vmul.f32 %v1888_v62, %v1224_v51 }
 0x208   :  { %1628 = vst [vmem:[%s3015_s3 + $0x68] sm:$0x1f] %v1596_v18  ;;  %v1595_v20 = vmul.f32 %v1890_v26, %v2721_v52  ;;  %v1388_v59 = vsel %vm1386_vm5, %v1387_v48, %v1385_v23 }
 0x209   :  { %v1504_v3 = vmax.f32 %v1388_v59, 1e-12  ;;  %v1378_v6 = vsel %vm1377_vm6, %v1224_v51, %v1376_v44  ;;  %v1237_v50 = vpop.xlane.xlu1 %1236 }
 0x20a   :  { %1627 = vst [vmem:[%s3015_s3 + $0x60] sm:$0xff] %v1595_v20  ;;  %v1381_v38 = vsel %vm1379_vm7, %v1380_v0, %v1378_v6  ;;  %1899 = vrsqrt.f32 %v1237_v50  ;;  %vm1412_vm12 = vcmp.eq.f32.partialorder %v1237_v50, inf  ;;  %v1415_v46 = vand.u32 2147483648, %v1237_v50 }
 0x20b   :  { %1901 = vrcp.f32 %v1504_v3  ;;  %v1503_v15 = vmax.f32 %v1381_v38, 1e-12  ;;  %v1234_v29 = vpop.xlane.xlu0 %1233  ;;  %vm1414_vm13 = vcmp.eq.f32.partialorder %v1237_v50, 0.0 }
 0x20c   :  { %v1892_v2 = vpop.eup %1891  ;;  %1903 = vrsqrt.f32 %v1234_v29  ;;  %vm1405_vm14 = vcmp.eq.f32.partialorder %v1234_v29, inf  ;;  %vm1407_vm15 = vcmp.eq.f32.partialorder %v1234_v29, 0.0 }
 0x20d   :  { %v1894_v45 = vpop.eup %1893  ;;  %1905 = vrcp.f32 %v1503_v15  ;;  %v1397_v52 = vmul.f32 %v1892_v2, %v1232_v11 }
 0x20e   :  { %v1896_v40 = vpop.eup %1895  ;;  %v1598_v55 = vmul.f32 %v1894_v45, %v2734_v43 }
 0x20f   :  { %v1898_v14 = vpop.eup %1897  ;;  %v1399_v21 = vsel %vm1398_vm8, %v1232_v11, %v1397_v52  ;;  %v1390_v25 = vmul.f32 %v1896_v40, %v1229_v27 }
 0x210   :  { %1630 = vst [vmem:[%s3015_s3 + $0x78] sm:$0x1f] %v1598_v55  ;;  %v1597_v51 = vmul.f32 %v1898_v14, %v2741_v30  ;;  %v1402_v10 = vsel %vm1400_vm9, %v1401_v42, %v1399_v21 }
 0x211   :  { %v1506_v33 = vmax.f32 %v1402_v10, 1e-12  ;;  %v1392_v13 = vsel %vm1391_vm10, %v1229_v27, %v1390_v25  ;;  %v1242_v32 = vpop.xlane.xlu1 %1241  ;;  %v1408_v27 = vand.u32 2147483648, %v1234_v29 }
 0x212   :  { %1629 = vst [vmem:[%s3015_s3 + $0x70] sm:$0xff] %v1597_v51  ;;  %v1395_v43 = vsel %vm1393_vm11, %v1394_v53, %v1392_v13  ;;  %1907 = vrsqrt.f32 %v1242_v32  ;;  %vm1426_vm0 = vcmp.eq.f32.partialorder %v1242_v32, inf  ;;  %v1429_v20 = vand.u32 2147483648, %v1242_v32 }
 0x213   :  { %1909 = vrcp.f32 %v1506_v33  ;;  %v1505_v54 = vmax.f32 %v1395_v43, 1e-12  ;;  %v1239_v22 = vpop.xlane.xlu0 %1238  ;;  %vm1428_vm1 = vcmp.eq.f32.partialorder %v1242_v32, 0.0 }
 0x214   :  { %v1900_v56 = vpop.eup %1899  ;;  %1911 = vrsqrt.f32 %v1239_v22  ;;  %vm1419_vm2 = vcmp.eq.f32.partialorder %v1239_v22, inf  ;;  %v1422_v38 = vand.u32 2147483648, %v1239_v22  ;;  %vm1421_vm3 = vcmp.eq.f32.partialorder %v1239_v22, 0.0 }
 0x215   :  { %v1902_v16 = vpop.eup %1901  ;;  %1913 = vrcp.f32 %v1505_v54  ;;  %v1411_v30 = vmul.f32 %v1900_v56, %v1237_v50 }
 0x216   :  { %v1904_v24 = vpop.eup %1903  ;;  %v1600_v58 = vmul.f32 %v1902_v16, %v2754_v4 }
 0x217   :  { %v1906_v19 = vpop.eup %1905  ;;  %v1413_v36 = vsel %vm1412_vm12, %v1237_v50, %v1411_v30  ;;  %v1404_v11 = vmul.f32 %v1904_v24, %v1234_v29 }
 0x218   :  { %1632 = vst [vmem:[%s3015_s3 + $0x88] sm:$0x1f] %v1600_v58  ;;  %v1599_v35 = vmul.f32 %v1906_v19, %v2761_v12  ;;  %v1416_v47 = vsel %vm1414_vm13, %v1415_v46, %v1413_v36 }
 0x219   :  { %v1508_v5 = vmax.f32 %v1416_v47, 1e-12  ;;  %v1406_v61 = vsel %vm1405_vm14, %v1234_v29, %v1404_v11  ;;  %v1247_v8 = vpop.xlane.xlu1 %1246 }
 0x21a   :  { %1631 = vst [vmem:[%s3015_s3 + $0x80] sm:$0xff] %v1599_v35  ;;  %v1409_v4 = vsel %vm1407_vm15, %v1408_v27, %v1406_v61  ;;  %1915 = vrsqrt.f32 %v1247_v8  ;;  %vm1440_vm4 = vcmp.eq.f32.partialorder %v1247_v8, inf  ;;  %v1443_v21 = vand.u32 2147483648, %v1247_v8 }
 0x21b   :  { %1917 = vrcp.f32 %v1508_v5  ;;  %v1507_v62 = vmax.f32 %v1409_v4, 1e-12  ;;  %v1244_v18 = vpop.xlane.xlu0 %1243  ;;  %vm1442_vm5 = vcmp.eq.f32.partialorder %v1247_v8, 0.0 }
 0x21c   :  { %v1908_v48 = vpop.eup %1907  ;;  %1919 = vrsqrt.f32 %v1244_v18  ;;  %vm1433_vm6 = vcmp.eq.f32.partialorder %v1244_v18, inf  ;;  %v1436_v13 = vand.u32 2147483648, %v1244_v18  ;;  %vm1435_vm7 = vcmp.eq.f32.partialorder %v1244_v18, 0.0 }
 0x21d   :  { %v1910_v26 = vpop.eup %1909  ;;  %1921 = vrcp.f32 %v1507_v62  ;;  %v1425_v12 = vmul.f32 %v1908_v48, %v1242_v32 }
 0x21e   :  { %v1912_v23 = vpop.eup %1911  ;;  %v1602_v44 = vmul.f32 %v1910_v26, %v2774_v49 }
 0x21f   :  { %v1914_v59 = vpop.eup %1913  ;;  %v1427_v0 = vsel %vm1426_vm0, %v1242_v32, %v1425_v12  ;;  %v1418_v3 = vmul.f32 %v1912_v23, %v1239_v22 }
 0x220   :  { %1634 = vst [vmem:[%s3015_s3 + $0x98] sm:$0x1f] %v1602_v44  ;;  %v1601_v6 = vmul.f32 %v1914_v59, %v2781_v63  ;;  %v1430_v50 = vsel %vm1428_vm1, %v1429_v20, %v1427_v0 }
 0x221   :  { %v1510_v15 = vmax.f32 %v1430_v50, 1e-12  ;;  %v1420_v29 = vsel %vm1419_vm2, %v1239_v22, %v1418_v3  ;;  %v1252_v2 = vpop.xlane.xlu1 %1251 }
 0x222   :  { %1633 = vst [vmem:[%s3015_s3 + $0x90] sm:$0xff] %v1601_v6  ;;  %v1423_v49 = vsel %vm1421_vm3, %v1422_v38, %v1420_v29  ;;  %1923 = vrsqrt.f32 %v1252_v2  ;;  %vm1454_vm8 = vcmp.eq.f32.partialorder %v1252_v2, inf  ;;  %v1457_v46 = vand.u32 2147483648, %v1252_v2 }
 0x223   :  { %1925 = vrcp.f32 %v1510_v15  ;;  %v1509_v45 = vmax.f32 %v1423_v49, 1e-12  ;;  %v1249_v52 = vpop.xlane.xlu0 %1248  ;;  %vm1456_vm9 = vcmp.eq.f32.partialorder %v1252_v2, 0.0 }
 0x224   :  { %v1916_v40 = vpop.eup %1915  ;;  %1927 = vrsqrt.f32 %v1249_v52  ;;  %vm1447_vm10 = vcmp.eq.f32.partialorder %v1249_v52, inf  ;;  %v1450_v27 = vand.u32 2147483648, %v1249_v52  ;;  %vm1449_vm11 = vcmp.eq.f32.partialorder %v1249_v52, 0.0 }
 0x225   :  { %v1918_v55 = vpop.eup %1917  ;;  %1929 = vrcp.f32 %v1509_v45  ;;  %v1439_v63 = vmul.f32 %v1916_v40, %v1247_v8 }
 0x226   :  { %v1920_v42 = vpop.eup %1919  ;;  %v1604_v14 = vmul.f32 %v1918_v55, %v2794_v31 }
 0x227   :  { %v1922_v25 = vpop.eup %1921  ;;  %v1441_v51 = vsel %vm1440_vm4, %v1247_v8, %v1439_v63  ;;  %v1432_v10 = vmul.f32 %v1920_v42, %v1244_v18 }
 0x228   :  { %1636 = vst [vmem:[%s3015_s3 + $0xa8] sm:$0x1f] %v1604_v14  ;;  %v1603_v53 = vmul.f32 %v1922_v25, %v2801_v37  ;;  %v1444_v33 = vsel %vm1442_vm5, %v1443_v21, %v1441_v51 }
 0x229   :  { %v1512_v32 = vmax.f32 %v1444_v33, 1e-12  ;;  %v1434_v43 = vsel %vm1433_vm6, %v1244_v18, %v1432_v10  ;;  %v1257_v54 = vpop.xlane.xlu1 %1256 }
 0x22a   :  { %1635 = vst [vmem:[%s3015_s3 + $0xa0] sm:$0xff] %v1603_v53  ;;  %v1437_v31 = vsel %vm1435_vm7, %v1436_v13, %v1434_v43  ;;  %1931 = vrsqrt.f32 %v1257_v54  ;;  %vm1468_vm12 = vcmp.eq.f32.partialorder %v1257_v54, inf  ;;  %v1471_v23 = vand.u32 2147483648, %v1257_v54 }
 0x22b   :  { %1933 = vrcp.f32 %v1512_v32  ;;  %v1511_v22 = vmax.f32 %v1437_v31, 1e-12  ;;  %v1254_v56 = vpop.xlane.xlu0 %1253  ;;  %vm1470_vm13 = vcmp.eq.f32.partialorder %v1257_v54, 0.0 }
 0x22c   :  { %v1924_v16 = vpop.eup %1923  ;;  %1935 = vrsqrt.f32 %v1254_v56  ;;  %vm1461_vm14 = vcmp.eq.f32.partialorder %v1254_v56, inf  ;;  %v1464_v6 = vand.u32 2147483648, %v1254_v56  ;;  %vm1463_vm15 = vcmp.eq.f32.partialorder %v1254_v56, 0.0 }
 0x22d   :  { %v1926_v30 = vpop.eup %1925  ;;  %1937 = vrcp.f32 %v1511_v22  ;;  %v1453_v37 = vmul.f32 %v1924_v16, %v1252_v2 }
 0x22e   :  { %v1928_v24 = vpop.eup %1927  ;;  %v1606_v58 = vmul.f32 %v1926_v30, %v2814_v28 }
 0x22f   :  { %v1930_v19 = vpop.eup %1929  ;;  %v1455_v36 = vsel %vm1454_vm8, %v1252_v2, %v1453_v37  ;;  %v1446_v11 = vmul.f32 %v1928_v24, %v1249_v52 }
 0x230   :  { %1638 = vst [vmem:[%s3015_s3 + $0xb8] sm:$0x1f] %v1606_v58  ;;  %v1605_v35 = vmul.f32 %v1930_v19, %v2821_v60  ;;  %v1458_v47 = vsel %vm1456_vm9, %v1457_v46, %v1455_v36 }
 0x231   :  { %v1514_v5 = vmax.f32 %v1458_v47, 1e-12  ;;  %v1448_v61 = vsel %vm1447_vm10, %v1249_v52, %v1446_v11  ;;  %v1262_v8 = vpop.xlane.xlu1 %1261  ;;  %v1259_v28 = vpop.xlane.xlu0 %1258 }
 0x232   :  { %1637 = vst [vmem:[%s3015_s3 + $0xb0] sm:$0xff] %v1605_v35  ;;  %v1451_v4 = vsel %vm1449_vm11, %v1450_v27, %v1448_v61  ;;  %1939 = vrsqrt.f32 %v1262_v8  ;;  %vm1482_vm0 = vcmp.eq.f32.partialorder %v1262_v8, inf  ;;  %v1485_v52 = vand.u32 2147483648, %v1262_v8 }
 0x233   :  { %1941 = vrcp.f32 %v1514_v5  ;;  %v1513_v62 = vmax.f32 %v1451_v4, 1e-12  ;;  %vm1484_vm1 = vcmp.eq.f32.partialorder %v1262_v8, 0.0  ;;  %vm1475_vm2 = vcmp.eq.f32.partialorder %v1259_v28, inf }
 0x234   :  { %v1932_v18 = vpop.eup %1931  ;;  %1943 = vrsqrt.f32 %v1259_v28  ;;  %v1478_v21 = vand.u32 2147483648, %v1259_v28  ;;  %vm1477_vm3 = vcmp.eq.f32.partialorder %v1259_v28, 0.0 }
 0x235   :  { %v1934_v48 = vpop.eup %1933  ;;  %1945 = vrcp.f32 %v1513_v62  ;;  %v1467_v60 = vmul.f32 %v1932_v18, %v1257_v54 }
 0x236   :  { %v1936_v26 = vpop.eup %1935  ;;  %v1608_v12 = vmul.f32 %v1934_v48, %v2832_v1 }
 0x237   :  { %v1938_v44 = vpop.eup %1937  ;;  %v1469_v20 = vsel %vm1468_vm12, %v1257_v54, %v1467_v60  ;;  %v1460_v59 = vmul.f32 %v1936_v26, %v1254_v56 }
 0x238   :  { %1640 = vst [vmem:[%s3015_s3 + $0xc8] sm:$0x1f] %v1608_v12  ;;  %v1607_v0 = vmul.f32 %v1938_v44, %v2837_v41  ;;  %v1472_v3 = vsel %vm1470_vm13, %v1471_v23, %v1469_v20 }
 0x239   :  { %v1516_v50 = vmax.f32 %v1472_v3, 1e-12  ;;  %v1462_v38 = vsel %vm1461_vm14, %v1254_v56, %v1460_v59 }
 0x23a   :  { %1639 = vst [vmem:[%s3015_s3 + $0xc0] sm:$0xff] %v1607_v0  ;;  %v1465_v1 = vsel %vm1463_vm15, %v1464_v6, %v1462_v38 }
 0x23b   :  { %1947 = vrcp.f32 %v1516_v50  ;;  %v1515_v15 = vmax.f32 %v1465_v1, 1e-12 }
 0x23c   :  { %v1940_v29 = vpop.eup %1939 }
 0x23d   :  { %v1942_v2 = vpop.eup %1941  ;;  %1949 = vrcp.f32 %v1515_v15  ;;  %v1481_v49 = vmul.f32 %v1940_v29, %v1262_v8 }
 0x23e   :  { %v1944_v45 = vpop.eup %1943  ;;  %v1610_v41 = vmul.f32 %v1942_v2, %v2848_v34 }
 0x23f   :  { %v1946_v40 = vpop.eup %1945  ;;  %v1483_v55 = vsel %vm1482_vm0, %v1262_v8, %v1481_v49  ;;  %v1474_v63 = vmul.f32 %v1944_v45, %v1259_v28 }
 0x240   :  { %1642 = vst [vmem:[%s3015_s3 + $0xd8] sm:$0x1f] %v1610_v41  ;;  %v1609_v42 = vmul.f32 %v1946_v40, %v2853_v17  ;;  %v1486_v14 = vsel %vm1484_vm1, %v1485_v52, %v1483_v55 }
 0x241   :  { %v1518_v25 = vmax.f32 %v1486_v14, 1e-12  ;;  %v1476_v51 = vsel %vm1475_vm2, %v1259_v28, %v1474_v63 }
 0x242   :  { %1641 = vst [vmem:[%s3015_s3 + $0xd0] sm:$0xff] %v1609_v42  ;;  %v1479_v34 = vsel %vm1477_vm3, %v1478_v21, %v1476_v51 }
 0x243   :  { %1951 = vrcp.f32 %v1518_v25  ;;  %v1517_v10 = vmax.f32 %v1479_v34, 1e-12 }
 0x245   :  { %v1948_v53 = vpop.eup %1947  ;;  %1953 = vrcp.f32 %v1517_v10 }
 0x246   :  { %v1612_v33 = vmul.f32 %v1948_v53, %v2863_v9 }
 0x247   :  { %v1950_v13 = vpop.eup %1949 }
 0x248   :  { %1644 = vst [vmem:[%s3015_s3 + $0xe8] sm:$0x1f] %v1612_v33  ;;  %v1611_v17 = vmul.f32 %v1950_v13, %v2867_v39 }
 0x24a   :  { %1643 = vst [vmem:[%s3015_s3 + $0xe0] sm:$0xff] %v1611_v17 }
 0x24d   :  { %v1952_v32 = vpop.eup %1951 }
 0x24e   :  { %v1614_v43 = vmul.f32 %v1952_v32, %v2875_v57 }
 0x24f   :  { %v1954_v54 = vpop.eup %1953 }
 0x250   :  { %1646 = vst [vmem:[%s3015_s3 + $0xf8] sm:$0x1f] %v1614_v43  ;;  %v1613_v9 = vmul.f32 %v1954_v54, %v2877_v7 }
 0x252   :  { %1645 = vst [vmem:[%s3015_s3 + $0xf0] sm:$0xff] %v1613_v9 }

</bundles_post_ra>
